<compile_context>
chip_gen: v6e
topology: v6e:2x2x1
jax: 0.10.0
libtpu: 0.0.40
codegen_flags: <defaults>
</compile_context>

<pallas_src>
import functools

import jax
import jax.numpy as jnp
from jax.experimental import pallas as pl
from jax.experimental.pallas import tpu as pltpu

CHANNELS = (3, 64, 128, 128, 256, 512)
C_IN_PAD = 8          # pad the 3 input channels to a sublane-friendly 8
OUT_C = 512
BN_EPS = 1e-5


def _lm_encoder_kernel(x_ref,
                       w1, w2, t2, w3, t3, w4, t4, w5, t5,
                       out_ref,
                       *, n_valid, need_mask, bf16_epilogue):
    """One (TB batches, TN points) tile through the full conv chain.

    x_ref  : (TB, TN, 8)    bf16  padded input channels [x, y, z, 1, 0, 0, 0, 0]
    w1     : (8, 64)        bf16  BN scale folded; row 3 carries the folded shift
    w2..w5 : (Cin, Cout)    bf16  BN scale folded into columns
    t2..t4 : (1, Cout)      bf16 (v6e/v7x) or f32 (v5e)   folded bias + BN shift
    t5     : (1, 512)       f32   applied once on the accumulator at the end
    out_ref: (1, TB, 512)   f32   running-max accumulator over the N-tile axis
    """
    n = pl.program_id(1)

    @pl.when(n == 0)
    def _init():
        out_ref[...] = jnp.full(out_ref.shape, -jnp.inf, dtype=out_ref.dtype)

    tb, tn, c_in = x_ref.shape
    # Merge the leading (TB) dim into the point dim -> matmul M = TB*TN.
    # (Layout-free reshape of a contiguous block; no sublane copies.)
    h = x_ref[...].reshape(tb * tn, c_in)                     # (M, 8) bf16

    def layer(h, w_ref, t_ref):
        y = jnp.dot(h, w_ref[...], preferred_element_type=jnp.float32)
        if bf16_epilogue:
            y = y.astype(jnp.bfloat16) + t_ref[...]           # packed bf16 VALU
        else:
            y = y + t_ref[...]                                # f32 path (v5e)
        return jnp.maximum(y, 0).astype(jnp.bfloat16)

    # Layer 1: bias rides the MXU via the constant-1 pad channel -> ReLU only.
    y1 = jnp.dot(h, w1[...], preferred_element_type=jnp.float32)
    if bf16_epilogue:
        y1 = y1.astype(jnp.bfloat16)
    h = jnp.maximum(y1, 0).astype(jnp.bfloat16)               # (M, 64)

    h = layer(h, w2, t2)                                      # (M, 128)
    h = layer(h, w3, t3)                                      # (M, 128)
    h = layer(h, w4, t4)                                      # (M, 256)

    # Layer 5: raw matmul only; bias + ReLU hoisted to the (TB, 512) accumulator.
    y5 = jnp.dot(h, w5[...], preferred_element_type=jnp.float32)   # (M, 512) f32
    y5 = y5.reshape(tb, tn, OUT_C)

    if need_mask:
        # Mask padded point rows (global index >= n_valid) to -inf before max.
        pid = n * tn + jax.lax.broadcasted_iota(jnp.int32, (1, tn, 1), 1)
        y5 = jnp.where(pid < n_valid, y5, -jnp.inf)

    tile_max = jnp.max(y5, axis=1)                            # (TB, 512)
    out_ref[...] = jnp.maximum(out_ref[...], tile_max[None])

    @pl.when(n == pl.num_programs(1) - 1)
    def _finalize():
        # max over points of relu(y + t5) == relu(max over points of y + t5).
        out_ref[...] = jnp.maximum(out_ref[...] + t5[...], 0.0)


def _largest_divisor_leq(n, cap):
    for d in range(min(n, cap), 0, -1):
        if n % d == 0:
            return d
    return 1


def _choose_tiles(B, N):
    """Pick (TB, TN, N_pad) for arbitrary B, N."""
    TN_CAP = 2048            # keep live (M, 512) f32 intermediates ~<= 4 MiB
    n_pad = ((N + 127) // 128) * 128
    if n_pad > TN_CAP:
        TN = TN_CAP
        n_pad = ((N + TN - 1) // TN) * TN
    else:
        TN = n_pad
    # Aim for matmul M = TB*TN ~ 1024 to amortise per-step overhead / MXU
    # fill-drain, but keep >= 2 batch grid steps when B allows (v7x megacore).
    M_TARGET = 1024
    tb_cap = max(1, M_TARGET // TN)
    if B >= 2:
        tb_cap = min(tb_cap, max(1, B // 2))
    TB = _largest_divisor_leq(B, tb_cap)
    return TB, TN, n_pad


def _default_bf16_epilogue():
    # bf16 VALU exists on v6e/v7x; v5e (and older) keep the f32 epilogue.
    try:
        kind = jax.devices()[0].device_kind.lower()
    except Exception:
        return True
    return not any(tag in kind for tag in ("v2", "v3", "v4", "v5"))


def lm_encoder_forward(x_ncw, params, *, bf16_epilogue=None):
    """x_ncw: (B, 3, N) float32, PyTorch NCW layout. Returns (B, 512) f32."""
    B, C, N = x_ncw.shape
    assert C == 3
    if bf16_epilogue is None:
        bf16_epilogue = _default_bf16_epilogue()

    TB, TN, N_pad = _choose_tiles(B, N)
    grid = (B // TB, N_pad // TN)
    need_mask = N_pad > N

    # NCW -> NWC, pad points to N_pad, channels 3 -> 8 as [x, y, z, 1, 0...].
    x = jnp.transpose(x_ncw, (0, 2, 1)).astype(jnp.float32)      # (B, N, 3)
    if need_mask:
        x = jnp.pad(x, ((0, 0), (0, N_pad - N), (0, 0)))
    x = jnp.concatenate(
        [x,
         jnp.ones((B, N_pad, 1), x.dtype),
         jnp.zeros((B, N_pad, C_IN_PAD - 4), x.dtype)], axis=-1)
    x = x.astype(jnp.bfloat16)                                    # (B, N_pad, 8)

    # Fold conv bias + eval-mode BN into the weights (scale) and one shift.
    flat_args = []
    in_specs = [pl.BlockSpec((TB, TN, C_IN_PAD), lambda b, n: (b, n, 0))]
    total_w_bytes = 0
    t_dtype = jnp.bfloat16 if bf16_epilogue else jnp.float32

    for i in range(5):
        w, bias, gamma, beta, mean, var = params[i]
        c_in, c_out = CHANNELS[i], CHANNELS[i + 1]
        s = gamma / jnp.sqrt(var + BN_EPS)                        # (C_out,)
        t = beta + (bias - mean) * s                              # (C_out,)
        w_t = jnp.transpose(w, (1, 0)) * s[None, :]               # (C_in, C_out)
        if i == 0:
            # Row 3 multiplies the constant-1 channel -> bias via the MXU.
            w_t = jnp.concatenate(
                [w_t, t[None, :],
                 jnp.zeros((C_IN_PAD - 4, c_out), w_t.dtype)], axis=0)  # (8, 64)
            c_in = C_IN_PAD
            flat_args.append(w_t.astype(jnp.bfloat16))
            in_specs.append(pl.BlockSpec((c_in, c_out), lambda b, n: (0, 0)))
            total_w_bytes += c_in * c_out * 2
        else:
            shift_dtype = jnp.float32 if i == 4 else t_dtype
            flat_args += [w_t.astype(jnp.bfloat16),
                          t.reshape(1, c_out).astype(shift_dtype)]
            in_specs += [pl.BlockSpec((c_in, c_out), lambda b, n: (0, 0)),
                         pl.BlockSpec((1, c_out), lambda b, n: (0, 0))]
            total_w_bytes += c_in * c_out * 2 + c_out * 4

    flops = 2 * B * N_pad * sum(CHANNELS[i] * CHANNELS[i + 1] for i in range(5))
    cost = pl.CostEstimate(
        flops=flops,
        transcendentals=0,
        bytes_accessed=int(x.size) * 2 + total_w_bytes + B * OUT_C * 4,
    )

    kernel = functools.partial(
        _lm_encoder_kernel,
        n_valid=N, need_mask=need_mask, bf16_epilogue=bf16_epilogue)

    out3 = pl.pallas_call(
        kernel,
        out_shape=jax.ShapeDtypeStruct((B // TB, TB, OUT_C), jnp.float32),
        grid_spec=pltpu.PrefetchScalarGridSpec(
            num_scalar_prefetch=0,
            grid=grid,
            in_specs=in_specs,
            out_specs=pl.BlockSpec((1, TB, OUT_C), lambda b, n: (b, 0, 0)),
        ),
        compiler_params=pltpu.CompilerParams(
            dimension_semantics=("parallel", "arbitrary"),
            vmem_limit_bytes=32 * 1024 * 1024,   # fits v7x's 64 MiB VMEM budget
        ),
        cost_estimate=cost,
    )(x, *flat_args)
    return out3.reshape(B, OUT_C)


def _reference_forward(x_ncw, params):
    """Pure-JAX f32 reference (eval-mode BN) for validation."""
    x = jnp.transpose(x_ncw, (0, 2, 1))  # (B, N, 3)
    for i in range(5):
        w, b, gamma, beta, mean, var = params[i]
        y = jnp.einsum("bnc,oc->bno", x, w) + b
        y = (y - mean) / jnp.sqrt(var + BN_EPS) * gamma + beta
        x = jnp.maximum(y, 0.0)
    return jnp.max(x, axis=1)  # (B, 512)


def make_params(key):
    params = []
    for i in range(5):
        c_in, c_out = CHANNELS[i], CHANNELS[i + 1]
        key, k_w, k_b, k_g, k_be, k_m, k_v = jax.random.split(key, 7)
        w = jax.random.normal(k_w, (c_out, c_in), jnp.float32) * 0.1
        b = jax.random.normal(k_b, (c_out,), jnp.float32) * 0.05
        gamma = 1.0 + 0.1 * jax.random.normal(k_g, (c_out,), jnp.float32)
        beta = 0.05 * jax.random.normal(k_be, (c_out,), jnp.float32)
        mean = 0.05 * jax.random.normal(k_m, (c_out,), jnp.float32)
        var = 1.0 + 0.1 * jax.random.uniform(k_v, (c_out,), jnp.float32)
        params.append((w, b, gamma, beta, mean, var))
    return params


if __name__ == "__main__":
    B = 2
    NUM_POINTS = 128  # num_points for the encoder / MaxPool1d window

    key = jax.random.PRNGKey(0)
    k_x, k_p = jax.random.split(key)
    x = jax.random.normal(k_x, (B, 3, NUM_POINTS), jnp.float32)  # PyTorch NCW input
    params = make_params(k_p)

    out = lm_encoder_forward(x, params)
    out = jax.block_until_ready(out)

    ref = _reference_forward(x, params)
    assert out.shape == (B, 512)
    # bf16 MXU inputs / bf16 epilogue (f32 accumulation) -> relaxed tolerance.
    assert jnp.allclose(out, ref, atol=5e-2, rtol=5e-2), "mismatch vs reference"
    print("KERNEL_OK")
</pallas_src>

<mosaic_0001>
module attributes {stable_mosaic.version = 11 : i64} {
  func.func @_lm_encoder_kernel(%arg0: i32, %arg1: i32, %arg2: memref<1x128x8xbf16, #tpu.memory_space<vmem>>, %arg3: memref<8x64xbf16, #tpu.memory_space<vmem>>, %arg4: memref<64x128xbf16, #tpu.memory_space<vmem>>, %arg5: memref<1x128xbf16, #tpu.memory_space<vmem>>, %arg6: memref<128x128xbf16, #tpu.memory_space<vmem>>, %arg7: memref<1x128xbf16, #tpu.memory_space<vmem>>, %arg8: memref<128x256xbf16, #tpu.memory_space<vmem>>, %arg9: memref<1x256xbf16, #tpu.memory_space<vmem>>, %arg10: memref<256x512xbf16, #tpu.memory_space<vmem>>, %arg11: memref<1x512xf32, #tpu.memory_space<vmem>>, %arg12: memref<1x1x512xf32, #tpu.memory_space<vmem>>) attributes {dimension_semantics = [#tpu.dimension_semantics<parallel>, #tpu.dimension_semantics<arbitrary>], iteration_bounds = array<i64: 2, 1>, scalar_prefetch = 0 : i64, scratch_operands = 0 : i64, tpu.core_type = #tpu.core_type<tc>, window_params = [{transform_indices = @transform_0, window_bounds = array<i64: 1, 128, 8>}, {pipeline_mode = #tpu.pipeline_mode<synchronous>, transform_indices = @transform_1, window_bounds = array<i64: 8, 64>}, {pipeline_mode = #tpu.pipeline_mode<synchronous>, transform_indices = @transform_2, window_bounds = array<i64: 64, 128>}, {pipeline_mode = #tpu.pipeline_mode<synchronous>, transform_indices = @transform_3, window_bounds = array<i64: 1, 128>}, {pipeline_mode = #tpu.pipeline_mode<synchronous>, transform_indices = @transform_4, window_bounds = array<i64: 128, 128>}, {pipeline_mode = #tpu.pipeline_mode<synchronous>, transform_indices = @transform_5, window_bounds = array<i64: 1, 128>}, {pipeline_mode = #tpu.pipeline_mode<synchronous>, transform_indices = @transform_6, window_bounds = array<i64: 128, 256>}, {pipeline_mode = #tpu.pipeline_mode<synchronous>, transform_indices = @transform_7, window_bounds = array<i64: 1, 256>}, {pipeline_mode = #tpu.pipeline_mode<synchronous>, transform_indices = @transform_8, window_bounds = array<i64: 256, 512>}, {pipeline_mode = #tpu.pipeline_mode<synchronous>, transform_indices = @transform_9, window_bounds = array<i64: 1, 512>}, {transform_indices = @transform_10, window_bounds = array<i64: 1, 1, 512>}]} {
    %c0_i32 = arith.constant 0 : i32
    %0 = arith.cmpi eq, %arg1, %c0_i32 : i32
    %1 = arith.extui %0 : i1 to i32
    %c0_i32_0 = arith.constant 0 : i32
    %2 = arith.cmpi ne, %1, %c0_i32_0 : i32
    scf.if %2 {
      %cst_36 = arith.constant 0xFF800000 : f32
      %45 = vector.broadcast %cst_36 : f32 to vector<1x1x512xf32>
      %c0_37 = arith.constant 0 : index
      %c0_38 = arith.constant 0 : index
      %c0_39 = arith.constant 0 : index
      %46 = vector.load %arg12[%c0_37, %c0_38, %c0_39] : memref<1x1x512xf32, #tpu.memory_space<vmem>>, vector<1x1x512xf32>
      tpu.vector_store %arg12[%c0_37, %c0_38, %c0_39], %45 {strides = array<i32>} : memref<1x1x512xf32, #tpu.memory_space<vmem>>, vector<1x1x512xf32>,
    } else {
    }
    %c0 = arith.constant 0 : index
    %c0_1 = arith.constant 0 : index
    %c0_2 = arith.constant 0 : index
    %3 = vector.load %arg2[%c0, %c0_1, %c0_2] : memref<1x128x8xbf16, #tpu.memory_space<vmem>>, vector<1x128x8xbf16>
    %4 = vector.shape_cast %3 : vector<1x128x8xbf16> to vector<128x8xbf16>
    %c0_3 = arith.constant 0 : index
    %c0_4 = arith.constant 0 : index
    %5 = vector.load %arg3[%c0_3, %c0_4] : memref<8x64xbf16, #tpu.memory_space<vmem>>, vector<8x64xbf16>
    %cst = arith.constant dense<0.000000e+00> : vector<128x64xf32>
    %6 = tpu.matmul %4, %5, %cst {dimension_numbers = #tpu.dot_dimension_numbers<[1], [0], [0], [1], [0, 0, 1, 1], [], []>} : vector<128x8xbf16>, vector<8x64xbf16>, vector<128x64xf32> -> vector<128x64xf32>
    %7 = arith.truncf %6 : vector<128x64xf32> to vector<128x64xbf16>
    %cst_5 = arith.constant 0.000000e+00 : bf16
    %8 = vector.broadcast %cst_5 : bf16 to vector<128x64xbf16>
    %9 = arith.maximumf %7, %8 : vector<128x64xbf16>
    %c0_6 = arith.constant 0 : index
    %c0_7 = arith.constant 0 : index
    %10 = vector.load %arg4[%c0_6, %c0_7] : memref<64x128xbf16, #tpu.memory_space<vmem>>, vector<64x128xbf16>
    %cst_8 = arith.constant dense<0.000000e+00> : vector<128x128xf32>
    %11 = tpu.matmul %9, %10, %cst_8 {dimension_numbers = #tpu.dot_dimension_numbers<[1], [0], [0], [1], [0, 0, 1, 1], [], []>} : vector<128x64xbf16>, vector<64x128xbf16>, vector<128x128xf32> -> vector<128x128xf32>
    %12 = arith.truncf %11 : vector<128x128xf32> to vector<128x128xbf16>
    %c0_9 = arith.constant 0 : index
    %c0_10 = arith.constant 0 : index
    %13 = vector.load %arg5[%c0_9, %c0_10] : memref<1x128xbf16, #tpu.memory_space<vmem>>, vector<1x128xbf16>
    %14 = vector.broadcast %13 : vector<1x128xbf16> to vector<128x128xbf16>
    %15 = arith.addf %12, %14 : vector<128x128xbf16>
    %cst_11 = arith.constant 0.000000e+00 : bf16
    %16 = vector.broadcast %cst_11 : bf16 to vector<128x128xbf16>
    %17 = arith.maximumf %15, %16 : vector<128x128xbf16>
    %c0_12 = arith.constant 0 : index
    %c0_13 = arith.constant 0 : index
    %18 = vector.load %arg6[%c0_12, %c0_13] : memref<128x128xbf16, #tpu.memory_space<vmem>>, vector<128x128xbf16>
    %cst_14 = arith.constant dense<0.000000e+00> : vector<128x128xf32>
    %19 = tpu.matmul %17, %18, %cst_14 {dimension_numbers = #tpu.dot_dimension_numbers<[1], [0], [0], [1], [0, 0, 1, 1], [], []>} : vector<128x128xbf16>, vector<128x128xbf16>, vector<128x128xf32> -> vector<128x128xf32>
    %20 = arith.truncf %19 : vector<128x128xf32> to vector<128x128xbf16>
    %c0_15 = arith.constant 0 : index
    %c0_16 = arith.constant 0 : index
    %21 = vector.load %arg7[%c0_15, %c0_16] : memref<1x128xbf16, #tpu.memory_space<vmem>>, vector<1x128xbf16>
    %22 = vector.broadcast %21 : vector<1x128xbf16> to vector<128x128xbf16>
    %23 = arith.addf %20, %22 : vector<128x128xbf16>
    %cst_17 = arith.constant 0.000000e+00 : bf16
    %24 = vector.broadcast %cst_17 : bf16 to vector<128x128xbf16>
    %25 = arith.maximumf %23, %24 : vector<128x128xbf16>
    %c0_18 = arith.constant 0 : index
    %c0_19 = arith.constant 0 : index
    %26 = vector.load %arg8[%c0_18, %c0_19] : memref<128x256xbf16, #tpu.memory_space<vmem>>, vector<128x256xbf16>
    %cst_20 = arith.constant dense<0.000000e+00> : vector<128x256xf32>
    %27 = tpu.matmul %25, %26, %cst_20 {dimension_numbers = #tpu.dot_dimension_numbers<[1], [0], [0], [1], [0, 0, 1, 1], [], []>} : vector<128x128xbf16>, vector<128x256xbf16>, vector<128x256xf32> -> vector<128x256xf32>
    %28 = arith.truncf %27 : vector<128x256xf32> to vector<128x256xbf16>
    %c0_21 = arith.constant 0 : index
    %c0_22 = arith.constant 0 : index
    %29 = vector.load %arg9[%c0_21, %c0_22] : memref<1x256xbf16, #tpu.memory_space<vmem>>, vector<1x256xbf16>
    %30 = vector.broadcast %29 : vector<1x256xbf16> to vector<128x256xbf16>
    %31 = arith.addf %28, %30 : vector<128x256xbf16>
    %cst_23 = arith.constant 0.000000e+00 : bf16
    %32 = vector.broadcast %cst_23 : bf16 to vector<128x256xbf16>
    %33 = arith.maximumf %31, %32 : vector<128x256xbf16>
    %c0_24 = arith.constant 0 : index
    %c0_25 = arith.constant 0 : index
    %34 = vector.load %arg10[%c0_24, %c0_25] : memref<256x512xbf16, #tpu.memory_space<vmem>>, vector<256x512xbf16>
    %cst_26 = arith.constant dense<0.000000e+00> : vector<128x512xf32>
    %35 = tpu.matmul %33, %34, %cst_26 {dimension_numbers = #tpu.dot_dimension_numbers<[1], [0], [0], [1], [0, 0, 1, 1], [], []>} : vector<128x256xbf16>, vector<256x512xbf16>, vector<128x512xf32> -> vector<128x512xf32>
    %36 = vector.shape_cast %35 : vector<128x512xf32> to vector<1x128x512xf32>
    %cst_27 = arith.constant dense<0xFF800000> : vector<1x512xf32>
    %37 = vector.multi_reduction <maximumf>, %36, %cst_27 [1] : vector<1x128x512xf32> to vector<1x512xf32>
    %c0_28 = arith.constant 0 : index
    %c0_29 = arith.constant 0 : index
    %c0_30 = arith.constant 0 : index
    %38 = vector.load %arg12[%c0_28, %c0_29, %c0_30] : memref<1x1x512xf32, #tpu.memory_space<vmem>>, vector<1x1x512xf32>
    %39 = vector.shape_cast %37 : vector<1x512xf32> to vector<1x1x512xf32>
    %40 = arith.maximumf %38, %39 : vector<1x1x512xf32>
    %c0_31 = arith.constant 0 : index
    %c0_32 = arith.constant 0 : index
    %c0_33 = arith.constant 0 : index
    %41 = vector.load %arg12[%c0_31, %c0_32, %c0_33] : memref<1x1x512xf32, #tpu.memory_space<vmem>>, vector<1x1x512xf32>
    tpu.vector_store %arg12[%c0_31, %c0_32, %c0_33], %40 {strides = array<i32>} : memref<1x1x512xf32, #tpu.memory_space<vmem>>, vector<1x1x512xf32>,
    %c0_i32_34 = arith.constant 0 : i32
    %42 = arith.cmpi eq, %arg1, %c0_i32_34 : i32
    %43 = arith.extui %42 : i1 to i32
    %c0_i32_35 = arith.constant 0 : i32
    %44 = arith.cmpi ne, %43, %c0_i32_35 : i32
    scf.if %44 {
      %c0_36 = arith.constant 0 : index
      %c0_37 = arith.constant 0 : index
      %c0_38 = arith.constant 0 : index
      %45 = vector.load %arg12[%c0_36, %c0_37, %c0_38] : memref<1x1x512xf32, #tpu.memory_space<vmem>>, vector<1x1x512xf32>
      %c0_39 = arith.constant 0 : index
      %c0_40 = arith.constant 0 : index
      %46 = vector.load %arg11[%c0_39, %c0_40] : memref<1x512xf32, #tpu.memory_space<vmem>>, vector<1x512xf32>
      %47 = vector.shape_cast %46 : vector<1x512xf32> to vector<1x1x512xf32>
      %48 = arith.addf %45, %47 : vector<1x1x512xf32>
      %cst_41 = arith.constant 0.000000e+00 : f32
      %49 = vector.broadcast %cst_41 : f32 to vector<1x1x512xf32>
      %50 = arith.maximumf %48, %49 : vector<1x1x512xf32>
      %c0_42 = arith.constant 0 : index
      %c0_43 = arith.constant 0 : index
      %c0_44 = arith.constant 0 : index
      %51 = vector.load %arg12[%c0_42, %c0_43, %c0_44] : memref<1x1x512xf32, #tpu.memory_space<vmem>>, vector<1x1x512xf32>
      tpu.vector_store %arg12[%c0_42, %c0_43, %c0_44], %50 {strides = array<i32>} : memref<1x1x512xf32, #tpu.memory_space<vmem>>, vector<1x1x512xf32>,
    } else {
    }
    return
  }
  func.func @transform_0(%arg0: i32, %arg1: i32) -> (i32, i32, i32) {
    %c0_i32 = arith.constant 0 : i32
    %c0_i32_0 = arith.constant 0 : i32
    return %arg0, %arg1, %c0_i32 : i32, i32, i32
  }
  func.func @transform_1(%arg0: i32, %arg1: i32) -> (i32, i32) {
    %c0_i32 = arith.constant 0 : i32
    %c0_i32_0 = arith.constant 0 : i32
    %c0_i32_1 = arith.constant 0 : i32
    return %c0_i32, %c0_i32_0 : i32, i32
  }
  func.func @transform_2(%arg0: i32, %arg1: i32) -> (i32, i32) {
    %c0_i32 = arith.constant 0 : i32
    %c0_i32_0 = arith.constant 0 : i32
    %c0_i32_1 = arith.constant 0 : i32
    return %c0_i32, %c0_i32_0 : i32, i32
  }
  func.func @transform_3(%arg0: i32, %arg1: i32) -> (i32, i32) {
    %c0_i32 = arith.constant 0 : i32
    %c0_i32_0 = arith.constant 0 : i32
    %c0_i32_1 = arith.constant 0 : i32
    return %c0_i32, %c0_i32_0 : i32, i32
  }
  func.func @transform_4(%arg0: i32, %arg1: i32) -> (i32, i32) {
    %c0_i32 = arith.constant 0 : i32
    %c0_i32_0 = arith.constant 0 : i32
    %c0_i32_1 = arith.constant 0 : i32
    return %c0_i32, %c0_i32_0 : i32, i32
  }
  func.func @transform_5(%arg0: i32, %arg1: i32) -> (i32, i32) {
    %c0_i32 = arith.constant 0 : i32
    %c0_i32_0 = arith.constant 0 : i32
    %c0_i32_1 = arith.constant 0 : i32
    return %c0_i32, %c0_i32_0 : i32, i32
  }
  func.func @transform_6(%arg0: i32, %arg1: i32) -> (i32, i32) {
    %c0_i32 = arith.constant 0 : i32
    %c0_i32_0 = arith.constant 0 : i32
    %c0_i32_1 = arith.constant 0 : i32
    return %c0_i32, %c0_i32_0 : i32, i32
  }
  func.func @transform_7(%arg0: i32, %arg1: i32) -> (i32, i32) {
    %c0_i32 = arith.constant 0 : i32
    %c0_i32_0 = arith.constant 0 : i32
    %c0_i32_1 = arith.constant 0 : i32
    return %c0_i32, %c0_i32_0 : i32, i32
  }
  func.func @transform_8(%arg0: i32, %arg1: i32) -> (i32, i32) {
    %c0_i32 = arith.constant 0 : i32
    %c0_i32_0 = arith.constant 0 : i32
    %c0_i32_1 = arith.constant 0 : i32
    return %c0_i32, %c0_i32_0 : i32, i32
  }
  func.func @transform_9(%arg0: i32, %arg1: i32) -> (i32, i32) {
    %c0_i32 = arith.constant 0 : i32
    %c0_i32_0 = arith.constant 0 : i32
    %c0_i32_1 = arith.constant 0 : i32
    return %c0_i32, %c0_i32_0 : i32, i32
  }
  func.func @transform_10(%arg0: i32, %arg1: i32) -> (i32, i32, i32) {
    %c0_i32 = arith.constant 0 : i32
    %c0_i32_0 = arith.constant 0 : i32
    %c0_i32_1 = arith.constant 0 : i32
    return %arg0, %c0_i32, %c0_i32_0 : i32, i32, i32
  }
}

</mosaic_0001>

<bundles_post_ra>
// kernel: tpu_custom_call.1
= control target key start
LH: loop header
LB: loop body
LE: loop exit
PB: predicated region body
PF: predicated region fallthrough
CT: control target
= control target key end

     0   :  { %s3232_s0 = inlined_call_operand.vmem [shape: bf16[2,128,8], index: 0, kind: input, shape index: {}]   ;;  %s3233_s1 = inlined_call_operand.vmem [shape: bf16[8,64], index: 1, kind: input, shape index: {}]   ;;  %s3234_s2 = inlined_call_operand.hbm [shape: bf16[64,128], index: 2, kind: input, shape index: {}]   ;;  %s3235_s3 = inlined_call_operand.vmem [shape: bf16[1,128], index: 3, kind: input, shape index: {}]   ;;  %s3236_s4 = inlined_call_operand.hbm [shape: bf16[128,128], index: 4, kind: input, shape index: {}]   ;;  %s3237_s5 = inlined_call_operand.vmem [shape: bf16[1,128], index: 5, kind: input, shape index: {}]   ;;  %s3238_s6 = inlined_call_operand.vmem [shape: bf16[128,256], index: 6, kind: input, shape index: {}]   ;;  %s3239_s7 = inlined_call_operand.vmem [shape: bf16[1,256], index: 7, kind: input, shape index: {}]   ;;  %s3240_s8 = inlined_call_operand.hbm [shape: bf16[256,512], index: 8, kind: input, shape index: {}]   ;;  %s3241_s9 = inlined_call_operand.vmem [shape: f32[1,512], index: 9, kind: input, shape index: {}]   ;;  %s3242_s10 = inlined_call_operand.hbm [shape: f32[2,1,512], index: 10, kind: output, shape index: {}]  }
   0x1   :  { %3245 = sst [smem:[#allocation14_spill]] %s3236_s4 }
   0x2   :  { %15 = vsyncpa [#allocation3], 0 }
   0x3   :  { %16 = vsyncpa [#allocation6], 0 }
   0x4   :  { %17 = vsyncpa [#allocation4], 0 }
   0x5   :  { %19 = vsyncpa [#allocation4 + $0x1], 0  ;;  %s2883_s13 = smov 0   ;;  %s2885_s14 = smov 0  }
   0x6   :  { %s2887_s15 = smov 0   ;;  %s2889_s16 = smov 0  }
   0x7   :  { %s2891_s17 = smov 0   ;;  %s2893_s18 = smov 0  }
   0x8 LB: > { %3246 = sst [smem:[#allocation12_spill]] %s2811_s17  ;;  %s2170_s19 = sadd.s32 4294967295, %s2815_s18   ;;  %s2815_s18 = sphi %s2893_s18, %s25_s18   ;;  %s2811_s17 = sphi %s2891_s17, %s3258_s17   ;;  %s2807_s16 = sphi %s2889_s16, %s3257_s16   ;;  %s2803_s15 = sphi %s2887_s15, %s3261_s15   ;;  %s2799_s14 = sphi %s2885_s14, %s3260_s14   ;;  %s2795_s13 = sphi %s2883_s13, %s3259_s13  }
   0x9   : > { %s2171_s20 = sadd.s32 4294967294, %s2815_s18   ;;  %s37_s21 = sadd.s32 1, %s2811_s17 }
   0xa   : > { %s261_s22 = sadd.s32 1, %s2803_s15  ;;  %p39_p0 = scmp.ge.s32.totalorder %s37_s21, 2 }
   0xb   : > { %p271_p1 = scmp.ne.s32.totalorder %s2803_s15, %s2799_s14  ;;  %p272_p2 = scmp.eq.s32.totalorder %s2170_s19, 1 }
   0xc   : > { %p277_p3 = scmp.ne.s32.totalorder %s2799_s14, %s2795_s13  ;;  %s3263_s21 = smov (%p39_p0, %s37_s21), 0 }
   0xd   : > { %3247 = sst [smem:[#allocation13_spill]] %s3263_s21  ;;  %p2923_p4 = por %p272_p2, %p271_p1 }
   0xe   : > { %p278_p5 = scmp.eq.s32.totalorder %s2171_s20, 1  ;;  %s258_s24 = ssub.s32 %s2811_s17, %s3263_s21 }
   0xf   : > { %p2172_p6 = scmp.ge.s32.totalorder %s2815_s18, 1  ;;  %p259_p7 = scmp.eq.s32.totalorder %s258_s24, 0 }
  0x10   : > { %p2930_p8 = por %p278_p5, %p277_p3  ;;  %p285_p9 = scmp.lt.s32.totalorder %s2815_s18, 3 }
  0x11   : > { %s2936_s26 = scalar_select %p259_p7, %s2803_s15, %s261_s22  }
  0x12   : > { %s3249_s25 = scalar_select %p2930_p8, 1, 0 }
  0x13   : > { %p2938_p10 = pnand %p2172_p6, %p285_p9  ;;  %p2942_p11 = scmp.eq.s32.totalorder %s2170_s19, 0 }
  0x14   : > { %s2817_s29 = smov [#allocation5]   ;;  %s2818_s12 = smov [#allocation2]  }
  0x15   : > { %p2434_p12 = pneg %p2938_p10  ;;  %s316_s30 = sshll.u32 %s2817_s29, 4  ;;  %s317_s30 = int_to_ptr.vmem [resolvable:$true] %s316_s30 }
  0x16   : > { %s300_s20 = sshll.u32 %s2818_s12, 4  ;;  %s2664_s19 = scalar_lea.vmem %s317_s30, 1024  ;;  %s301_s20 = int_to_ptr.vmem [resolvable:$true] %s300_s20 }
  0x17   : > { %p2950_p13 = pnand %p2942_p11, %p2434_p12  ;;  %p2665_p1 = scmp.ne.s32.totalorder %s317_s30, %s2664_s19 }
  0x18   : > { %p2672_p5 = scmp.lt.s32.totalorder %s317_s30, %s317_s30  ;;  %p2673_p6 = scmp.lt.s32.totalorder %s2664_s19, %s2664_s19 }
  0x19   : > { %p2655_p0 = pneg %p2950_p13 }
  0x1a   : > { %p2674_p7 = por %p2673_p6, %p2672_p5 }
  0x1b   : > { %p2667_p2 = pnand %p2665_p1, %p2655_p0 }
  0x1d   : > { %p2668_p3 = pneg %p2667_p2 }
  0x1f   : > { %p2675_p9 = pnand %p2674_p7, %p2668_p3 }
  0x21   : > { %2678 = shalt.err (!%p2675_p9)
}
  0x22   : > { %s2819_s22 = smov 64   ;;  %s2820_s24 = smov 4  }
  0x23   : > { %s3253_s4 = sld [smem:[#allocation14_spill]]  ;;  %s2690_s21 = scalar_lea.vmem %s301_s20, 512 }
  0x24   : > { %p2691_p12 = scmp.ne.s32.totalorder %s301_s20, %s2690_s21  ;;  %p2698_p8 = scmp.lt.s32.totalorder %s301_s20, %s301_s20 }
  0x25   : > { %p2699_p5 = scmp.lt.s32.totalorder %s2690_s21, %s2690_s21 }
  0x26   : > { %p2693_p1 = pnand %p2691_p12, %p2655_p0 }
  0x27   : > { %p2700_p3 = por %p2699_p5, %p2698_p8 }
  0x28   : > { %p2694_p2 = pneg %p2693_p1 }
  0x29   : > { %2440 = dma.hbm_to_vmem [thread:$0]  (!%p2950_p13), %s3253_s4, 1024, %s317_s30, [#allocation6], %s2819_s22, %s2819_s22, %s2820_s24  }
  0x2a   : > { %p2701_p6 = pnand %p2700_p3, %p2694_p2 }
  0x2c   : > { %2704 = shalt.err (!%p2701_p6)
}
  0x2d   : > { %2437 = dma.hbm_to_vmem [thread:$0]  (!%p2950_p13), %s3234_s2, 512, %s301_s20, [#allocation3], %s2819_s22, %s2819_s22, %s2820_s24  }
  0x2e   : > { %s2821_s30 = smov [#allocation7]  }
  0x2f   : > { %s338_s29 = sshll.u32 %s2821_s30, 4  ;;  %s339_s29 = int_to_ptr.vmem [resolvable:$true] %s338_s29 }
  0x30   : > { %s2716_s12 = scalar_lea.vmem %s339_s29, 8192  ;;  %p2724_p1 = scmp.lt.s32.totalorder %s339_s29, %s339_s29 }
  0x31   : > { %p2717_p7 = scmp.ne.s32.totalorder %s339_s29, %s2716_s12  ;;  %p2725_p8 = scmp.lt.s32.totalorder %s2716_s12, %s2716_s12 }
  0x33   : > { %p2719_p9 = pnand %p2717_p7, %p2655_p0  ;;  %p2726_p2 = por %p2725_p8, %p2724_p1 }
  0x35   : > { %p2720_p12 = pneg %p2719_p9 }
  0x37   : > { %p2727_p5 = pnand %p2726_p2, %p2720_p12 }
  0x39   : > { %2730 = shalt.err (!%p2727_p5)
}
  0x3a   : > { %s2822_s21 = smov 256   ;;  %s2823_s4 = smov 16  }
  0x3b   : > { %2443 = dma.hbm_to_vmem [thread:$0]  (!%p2950_p13), %s3240_s8, 8192, %s339_s29, [#allocation6], %s2822_s21, %s2822_s21, %s2823_s4  }
  0x3c   : > { %370 = sbr.rel (%p2938_p10) target bundleno = 1201 (0x4b1), region = 60 }
  0x41   : > { %2782 = dma.done.wait (%p2942_p11), [#allocation3], 512  }
  0x42   : > { %2784 = vsyncadd (%p2942_p11), [#allocation3], 4294966784 }
  0x43   : > { %2786 = dma.done.wait (%p2942_p11), [#allocation6], 9216  }
  0x44   : > { %2788 = vsyncadd (%p2942_p11), [#allocation6], 4294958080  ;;  %p421_p0 = scmp.lt.s32.totalorder %s2807_s16, 1  ;;  %vm522_vm0 = vcmask 1043456   ;;  %vm497_vm1 = vcmask 64512   ;;  %v2521_v7 = vld [vmem:[#allocation2 + $0x18] sm:$0xff]  }
  0x45   : > { %v456_v0 = vld [vmem:[%s3233_s1] sm:$0xf]  ;;  %2363 = vmatprep.subr.bf16.mxu1 %v2521_v7  ;;  %v2522_v11 = vld [vmem:[#allocation2 + $0x10] sm:$0xff]   ;;  %v2523_v12 = vld [vmem:[#allocation2 + $0x8] sm:$0xff]   ;;  %vm671_vm2 = vcmask 523264   ;;  %v2824_v26 = vmov 0  }
  0x46   : > { %s422_s11 = scalar_select %p421_p0, %s2807_s16, 1  ;;  %2419 = vmatprep.subr.msk.bf16.mxu0 %vm522_vm0, %v456_v0  ;;  %v524_v1 = vsel %vm522_vm0, %v456_v0, 0  ;;  %2364 = vmatpush3.bf16.msra.mxu1 %v2521_v7  ;;  %v2524_v13 = vld [vmem:[#allocation2] sm:$0xff]   ;;  %v2525_v14 = vld [vmem:[#allocation5 + $0x38] sm:$0xff]   ;;  %v2526_v15 = vld [vmem:[#allocation5 + $0x30] sm:$0xff]  }
  0x47   : > { %2346 = vmatpush3.bf16.msra.mxu0 %v524_v1  ;;  %2365 = vmatprep.subr.bf16.mxu1 %v2522_v11  ;;  %v2527_v16 = vld [vmem:[#allocation5 + $0x28] sm:$0xff]   ;;  %v2528_v17 = vld [vmem:[#allocation5 + $0x20] sm:$0xff]   ;;  %v2529_v18 = vld [vmem:[#allocation5 + $0x18] sm:$0xff]   ;;  %v435_v1 = vlaneseq  ;;  %s417_s30 = sand.u32 1, %s2799_s14   ;;  %s2307_s17 = sshll.u32 %s2807_s16, 6 }
  0x48   : > { %s2306_s4 = sshll.u32 %s422_s11, 6  ;;  %2387 = vmatprep.subr.bf16.mxu0 %v2525_v14  ;;  %v2530_v52 = vld [vmem:[#allocation5 + $0x10] sm:$0xff]   ;;  %v2531_v53 = vld [vmem:[#allocation5 + $0x8] sm:$0xff]   ;;  %v2532_v54 = vld [vmem:[#allocation5] sm:$0xff]   ;;  %s2181_s28 = sshll.u32 %s417_s30, 2 }
  0x49   : > { %s428_s24 = scalar_lea.vmem %s3232_s0, %s2306_s4  ;;  %v2533_v55 = vld [vmem:[%s3238_s6 + $0x70] ss:$8 sps:$4 sm:$0xff]   ;;  %v2535_v56 = vld [vmem:[%s3238_s6 + $0x74] ss:$8 sps:$4 sm:$0xff]   ;;  %v2538_v57 = vld [vmem:[%s3238_s6 + $0x64] ss:$8 sps:$4 sm:$0xff]   ;;  %s2064_s27 = scalar_lea.hbm %s3242_s10, %s2307_s17 }
  0x4a   : > { %v2513_v2 = vld [vmem:[%s428_s24] sm:$0xff]   ;;  %v2514_v3 = vld [vmem:[%s428_s24 + $0x8] sm:$0xff]   ;;  %v2515_v4 = vld [vmem:[%s428_s24 + $0x10] sm:$0xff]   ;;  %2366 = vmatpush3.bf16.msra.mxu1 %v2522_v11  ;;  %vm3168_vm3 = vcmp.lt.s32.totalorder %v435_v1, 512  ;;  %s3172_s29 = scalar_lea.vmem [#allocation8], %s2181_s28  ;;  %s2052_s22 = scalar_lea.sflag [#allocation4], %s417_s30 }
  0x4b   : > { %2347 = vmatprep.mubr.msk.bf16.mxu0 %vm497_vm1, %v2513_v2  ;;  %v2516_v5 = vld [vmem:[%s428_s24 + $0x18] sm:$0xff]   ;;  %v2517_v6 = vld [vmem:[%s428_s24 + $0x20] sm:$0xff]   ;;  %v2518_v8 = vld [vmem:[%s428_s24 + $0x28] sm:$0xff]   ;;  %2367 = vmatprep.subr.bf16.mxu1 %v2523_v12  ;;  %v3054_v2 = vshrl.u32 %v435_v1, 7  ;;  %s2066_s20 = sshll.u32 %s3172_s29, 4  ;;  %s2827_s19 = smov [#allocation8]   ;;  %s2067_s20 = int_to_ptr.vmem [resolvable:$true] %s2066_s20 }
  0x4c   : > { %2348 = vmatmul.mubr.msk.bf16.vlgmr.msra.gmra.mxu0 %vm497_vm1, %v2514_v3  ;;  %v2519_v9 = vld [vmem:[%s428_s24 + $0x30] sm:$0xff]   ;;  %v2520_v10 = vld [vmem:[%s428_s24 + $0x38] sm:$0xff]   ;;  %v2536_v58 = vld [vmem:[%s3238_s6 + $0x60] ss:$8 sps:$4 sm:$0xff]   ;;  %s2731_s24 = scalar_lea.vmem %s2067_s20, 64  ;;  %s2735_s16 = sshll.u32 %s2827_s19, 4  ;;  %s2736_s16 = int_to_ptr.vmem [resolvable:$false] %s2735_s16 }
  0x4d   : > { %2351 = vmatprep.mubr.msk.bf16.mxu0 %vm497_vm1, %v2515_v4  ;;  %2388 = vmatpush3.bf16.msra.mxu0 %v2525_v14  ;;  %v2541_v59 = vld [vmem:[%s3238_s6 + $0x54] ss:$8 sps:$4 sm:$0xff]   ;;  %v2539_v60 = vld [vmem:[%s3238_s6 + $0x50] ss:$8 sps:$4 sm:$0xff]   ;;  %v2544_v61 = vld [vmem:[%s3238_s6 + $0x44] ss:$8 sps:$4 sm:$0xff]   ;;  %p2732_p10 = scmp.ne.s32.totalorder %s2067_s20, %s2731_s24  ;;  %p2738_p3 = scmp.lt.s32.totalorder %s2067_s20, %s2736_s16 }
  0x4e   : > { %2368 = vmatpush3.bf16.msra.mxu1 %v2523_v12  ;;  %2389 = vmatprep.subr.bf16.mxu0 %v2526_v15  ;;  %v2542_v62 = vld [vmem:[%s3238_s6 + $0x40] ss:$8 sps:$4 sm:$0xff]   ;;  %v2547_v63 = vld [vmem:[%s3238_s6 + $0x34] ss:$8 sps:$4 sm:$0xff]   ;;  %v2545_v0 = vld [vmem:[%s3238_s6 + $0x30] ss:$8 sps:$4 sm:$0xff]  }
  0x4f   : > { %2369 = vmatprep.subr.bf16.mxu1 %v2524_v13  ;;  %v801_v3 = vld [vmem:[%s3235_s3] sm:$0x1]  ;;  %p2733_p11 = pnand %p2732_p10, %p2923_p4  ;;  %s2737_s28 = scalar_lea.vmem %s2736_s16, 128 }
  0x50   : > { %p2739_p6 = scmp.lt.s32.totalorder %s2737_s28, %s2731_s24 }
  0x51   : > { %2390 = vmatpush3.bf16.msra.mxu0 %v2526_v15  ;;  %p2734_p13 = pneg %p2733_p11 }
  0x52   : > { %2370 = vmatpush3.bf16.msra.mxu1 %v2524_v13  ;;  %2391 = vmatprep.subr.bf16.mxu0 %v2527_v16  ;;  %p2740_p7 = por %p2739_p6, %p2738_p3 }
  0x53   : > { %1114 = vmatprep.subr.bf16.mxu1 %v2535_v56  ;;  %v2562_v56 = vld [vmem:[#allocation7 + $0xe4] ss:$16 sps:$4 sm:$0xff]  }
  0x54   : > { %2352 = vmatmul.mubr.msk.bf16.gmra.mxu0 %vm497_vm1, %v2516_v5  ;;  %v803_v5 = vpack.i.b16 %v801_v3, %v801_v3  ;;  %v2592_v3 = vld [vmem:[#allocation7 + $0x44] ss:$16 sps:$4 sm:$0xff]   ;;  %p2741_p9 = pnand %p2740_p7, %p2734_p13 }
  0x55   : > { %2355 = vmatprep.mubr.msk.bf16.mxu0 %vm497_vm1, %v2517_v6  ;;  %2392 = vmatpush3.bf16.msra.mxu0 %v2527_v16  ;;  %v3060_v6 = vsub.s32 0, %v3054_v2 }
  0x56   : > { %2393 = vmatprep.subr.bf16.mxu0 %v2528_v17 }
  0x59   : > { %2394 = vmatpush3.bf16.msra.mxu0 %v2528_v17 }
  0x5a   : > { %2395 = vmatprep.subr.bf16.mxu0 %v2529_v18 }
  0x5c   : > { %2356 = vmatmul.mubr.msk.bf16.gmra.mxu0 %vm497_vm1, %v2518_v8 }
  0x5d   : > { %2359 = vmatprep.mubr.msk.bf16.mxu0 %vm497_vm1, %v2519_v9  ;;  %2396 = vmatpush3.bf16.msra.mxu0 %v2529_v18  ;;  %v808_v9 = vrot.slane %v803_v5, %v3060_v6  ;;  %v2598_v5 = vld [vmem:[#allocation7 + $0x24] ss:$16 sps:$4 sm:$0xff]  }
  0x5e   : > { %2397 = vmatprep.subr.bf16.mxu0 %v2530_v52 }
  0x61   : > { %2398 = vmatpush3.bf16.msra.mxu0 %v2530_v52  ;;  %v2556_v52 = vld [vmem:[%s3238_s6 + $0x4] ss:$8 sps:$4 sm:$0xff]  }
  0x62   : > { %2399 = vmatprep.subr.bf16.mxu0 %v2531_v53 }
  0x64   : > { %2360 = vmatmul.mubr.msk.bf16.gmra.mxu0 %vm497_vm1, %v2520_v10 }
  0x65   : > { %2400 = vmatpush3.bf16.msra.mxu0 %v2531_v53  ;;  %v2554_v53 = vld [vmem:[%s3238_s6] ss:$8 sps:$4 sm:$0xff]  }
  0x66   : > { %2401 = vmatprep.subr.bf16.mxu0 %v2532_v54 }
  0x69   : > { %2402 = vmatpush3.bf16.msra.mxu0 %v2532_v54  ;;  %v2559_v54 = vld [vmem:[#allocation7 + $0xec] ss:$16 sps:$4 sm:$0xff]  }
  0x6a   : > { %1697 = vmatprep.subr.bf16.mxu0 %v2562_v56 }
 0x10c   : > { %v2349_v19 = vpop.f32.mrf.mxu0 }
 0x10e   : > { %v560_v20 = vpop.f32.mrf.mxu0 }
 0x110   : > { %v2350_v21 = vpop.f32.mrf.mxu0 }
 0x111   : > { %v624_v22 = vpack.c.bf16 %v2350_v21, %v2349_v19 }
 0x112   : > { %v563_v23 = vpop.f32.mrf.mxu0 }
 0x113   : > { %v623_v24 = vpack.c.bf16 %v563_v23, %v560_v20  ;;  %v632_v28 = vmax.bf16 %v2824_v26, %v624_v22 }
 0x114   : > { %v2353_v25 = vpop.f32.mrf.mxu0 }
 0x115   : > { %v631_v27 = vmax.bf16 %v2824_v26, %v623_v24 }
 0x116   : > { %v576_v29 = vpop.f32.mrf.mxu0 }
 0x117   : > { %2371 = vmatprep.mubr.msk.bf16.mxu1 %vm671_vm2, %v631_v27 }
 0x118   : > { %v2354_v30 = vpop.f32.mrf.mxu0  ;;  %2372 = vmatmul.mubr.msk.bf16.vlgmr.msra.gmra.mxu1 %vm671_vm2, %v632_v28 }
 0x119   : > { %v626_v31 = vpack.c.bf16 %v2354_v30, %v2353_v25  ;;  %1115 = vmatpush1.bf16.msra.mxu1 %v2533_v55  ;;  %v2560_v55 = vld [vmem:[#allocation7 + $0xe0] ss:$16 sps:$4 sm:$0xff]  }
 0x11a   : > { %v579_v32 = vpop.f32.mrf.mxu0  ;;  %1116 = vmatprep.subr.bf16.mxu1 %v2538_v57  ;;  %v2568_v57 = vld [vmem:[#allocation7 + $0xc4] ss:$16 sps:$4 sm:$0xff]  }
 0x11b   : > { %v625_v33 = vpack.c.bf16 %v579_v32, %v576_v29  ;;  %v634_v34 = vmax.bf16 %v2824_v26, %v626_v31 }
 0x11c   : > { %v2357_v35 = vpop.f32.mrf.mxu0 }
 0x11d   : > { %v633_v36 = vmax.bf16 %v2824_v26, %v625_v33  ;;  %1117 = vmatpush1.bf16.msra.mxu1 %v2536_v58  ;;  %v2566_v58 = vld [vmem:[#allocation7 + $0xc0] ss:$16 sps:$4 sm:$0xff]  }
 0x11e   : > { %v592_v37 = vpop.f32.mrf.mxu0  ;;  %1118 = vmatprep.subr.bf16.mxu1 %v2541_v59  ;;  %v2574_v59 = vld [vmem:[#allocation7 + $0xa4] ss:$16 sps:$4 sm:$0xff]  }
 0x11f   : > { %2375 = vmatprep.mubr.msk.bf16.mxu1 %vm671_vm2, %v633_v36 }
 0x120   : > { %v2358_v38 = vpop.f32.mrf.mxu0  ;;  %2376 = vmatmul.mubr.msk.bf16.gmra.mxu1 %vm671_vm2, %v634_v34 }
 0x121   : > { %v628_v39 = vpack.c.bf16 %v2358_v38, %v2357_v35  ;;  %1119 = vmatpush1.bf16.msra.mxu1 %v2539_v60  ;;  %v2572_v60 = vld [vmem:[#allocation7 + $0xa0] ss:$16 sps:$4 sm:$0xff]  }
 0x122   : > { %v595_v40 = vpop.f32.mrf.mxu0  ;;  %1120 = vmatprep.subr.bf16.mxu1 %v2544_v61  ;;  %v2580_v61 = vld [vmem:[#allocation7 + $0x84] ss:$16 sps:$4 sm:$0xff]  }
 0x123   : > { %v627_v41 = vpack.c.bf16 %v595_v40, %v592_v37  ;;  %v636_v42 = vmax.bf16 %v2824_v26, %v628_v39 }
 0x124   : > { %v2361_v43 = vpop.f32.mrf.mxu0 }
 0x125   : > { %v635_v44 = vmax.bf16 %v2824_v26, %v627_v41  ;;  %1121 = vmatpush1.bf16.msra.mxu1 %v2542_v62  ;;  %v2578_v62 = vld [vmem:[#allocation7 + $0x80] ss:$16 sps:$4 sm:$0xff]  }
 0x126   : > { %v608_v45 = vpop.f32.mrf.mxu0  ;;  %1122 = vmatprep.subr.bf16.mxu1 %v2547_v63  ;;  %v2586_v63 = vld [vmem:[#allocation7 + $0x64] ss:$16 sps:$4 sm:$0xff]  }
 0x127   : > { %2379 = vmatprep.mubr.msk.bf16.mxu1 %vm671_vm2, %v635_v44 }
 0x128   : > { %2380 = vmatmul.mubr.msk.bf16.gmra.mxu1 %vm671_vm2, %v636_v42  ;;  %v2362_v46 = vpop.f32.mrf.mxu0 }
 0x129   : > { %v630_v47 = vpack.c.bf16 %v2362_v46, %v2361_v43  ;;  %1123 = vmatpush1.bf16.msra.mxu1 %v2545_v0  ;;  %v2584_v0 = vld [vmem:[#allocation7 + $0x60] ss:$16 sps:$4 sm:$0xff]  }
 0x12a   : > { %v611_v48 = vpop.f32.mrf.mxu0 }
 0x12b   : > { %v629_v49 = vpack.c.bf16 %v611_v48, %v608_v45  ;;  %v638_v50 = vmax.bf16 %v2824_v26, %v630_v47  ;;  %v2550_v48 = vld [vmem:[%s3238_s6 + $0x24] ss:$8 sps:$4 sm:$0xff]  }
 0x12c   : > { %1124 = vmatprep.subr.bf16.mxu1 %v2550_v48  ;;  %v2583_v48 = vld [vmem:[#allocation7 + $0x6c] ss:$16 sps:$4 sm:$0xff]  }
 0x12d   : > { %v637_v51 = vmax.bf16 %v2824_v26, %v629_v49  ;;  %v2548_v49 = vld [vmem:[%s3238_s6 + $0x20] ss:$8 sps:$4 sm:$0xff]  }
 0x12e   : > { %1125 = vmatpush1.bf16.msra.mxu1 %v2548_v49 }
 0x12f   : > { %2383 = vmatprep.mubr.msk.bf16.mxu1 %vm671_vm2, %v637_v51  ;;  %v2551_v51 = vld [vmem:[%s3238_s6 + $0x10] ss:$8 sps:$4 sm:$0xff]  }
 0x130   : > { %2384 = vmatmul.mubr.msk.bf16.gmra.mxu1 %vm671_vm2, %v638_v50  ;;  %v2553_v50 = vld [vmem:[%s3238_s6 + $0x14] ss:$8 sps:$4 sm:$0xff]  }
 0x131   : > { %1146 = vmatprep.mubr.bf16.mxu1 %v2824_v26  ;;  %1126 = vmatprep.subr.bf16.mxu1 %v2553_v50  ;;  %v2581_v50 = vld [vmem:[#allocation7 + $0x68] ss:$16 sps:$4 sm:$0xff]  }
 0x132   : > { %1127 = vmatpush1.bf16.msra.mxu1 %v2551_v51 }
 0x133   : > { %1128 = vmatprep.subr.bf16.mxu1 %v2556_v52 }
 0x136   : > { %1129 = vmatpush1.bf16.msra.mxu1 %v2554_v53  ;;  %v2589_v53 = vld [vmem:[#allocation7 + $0x4c] ss:$16 sps:$4 sm:$0xff]  }
 0x137   : > { %1810 = vmatprep.subr.bf16.mxu1 %v2559_v54 }
 0x1d8   : > { %v2373_v4 = vpop.f32.mrf.mxu1 }
 0x1da   : > { %v730_v7 = vpop.f32.mrf.mxu1 }
 0x1dc   : > { %v2374_v8 = vpop.f32.mrf.mxu1 }
 0x1dd   : > { %v794_v10 = vpack.c.bf16 %v2374_v8, %v2373_v4  ;;  %v2590_v4 = vld [vmem:[#allocation7 + $0x40] ss:$16 sps:$4 sm:$0xff]   ;;  %v2604_v8 = vld [vmem:[#allocation7 + $0x4] ss:$16 sps:$4 sm:$0xff]  }
 0x1de   : > { %v733_v11 = vpop.f32.mrf.mxu1 }
 0x1df   : > { %v793_v12 = vpack.c.bf16 %v733_v11, %v730_v7  ;;  %v810_v13 = vadd.bf16 %v808_v9, %v794_v10  ;;  %v2596_v7 = vld [vmem:[#allocation7 + $0x20] ss:$16 sps:$4 sm:$0xff]   ;;  %v2610_v10 = vld [vmem:[#allocation7 + $0x1e4] ss:$16 sps:$4 sm:$0xff]  }
 0x1e0   : > { %v2377_v14 = vpop.f32.mrf.mxu1  ;;  %v2608_v11 = vld [vmem:[#allocation7 + $0x1e0] ss:$16 sps:$4 sm:$0xff]  }
 0x1e1   : > { %v809_v15 = vadd.bf16 %v808_v9, %v793_v12  ;;  %v818_v18 = vmax.bf16 %v2824_v26, %v810_v13  ;;  %v2616_v12 = vld [vmem:[#allocation7 + $0x1c4] ss:$16 sps:$4 sm:$0xff]   ;;  %v2614_v13 = vld [vmem:[#allocation7 + $0x1c0] ss:$16 sps:$4 sm:$0xff]  }
 0x1e2   : > { %v746_v16 = vpop.f32.mrf.mxu1 }
 0x1e3   : > { %v817_v17 = vmax.bf16 %v2824_v26, %v809_v15  ;;  %v2620_v15 = vld [vmem:[#allocation7 + $0x1a0] ss:$16 sps:$4 sm:$0xff]  }
 0x1e4   : > { %v2378_v19 = vpop.f32.mrf.mxu1 }
 0x1e5   : > { %v796_v20 = vpack.c.bf16 %v2378_v19, %v2377_v14  ;;  %2403 = vmatprep.mubr.bf16.mxu0 %v817_v17  ;;  %v2622_v14 = vld [vmem:[#allocation7 + $0x1a4] ss:$16 sps:$4 sm:$0xff]   ;;  %v2626_v17 = vld [vmem:[#allocation7 + $0x180] ss:$16 sps:$4 sm:$0xff]  }
 0x1e6   : > { %v749_v21 = vpop.f32.mrf.mxu1  ;;  %2404 = vmatmul.mubr.bf16.vlgmr.msra.gmra.mxu0 %v818_v18  ;;  %v2634_v18 = vld [vmem:[#allocation7 + $0x164] ss:$16 sps:$4 sm:$0xff]   ;;  %v2632_v19 = vld [vmem:[#allocation7 + $0x160] ss:$16 sps:$4 sm:$0xff]  }
 0x1e7   : > { %v795_v22 = vpack.c.bf16 %v749_v21, %v746_v16  ;;  %v812_v23 = vadd.bf16 %v808_v9, %v796_v20  ;;  %1698 = vmatpush1.bf16.msra.mxu0 %v2560_v55  ;;  %v2628_v16 = vld [vmem:[#allocation7 + $0x184] ss:$16 sps:$4 sm:$0xff]   ;;  %v994_v21 = vld [vmem:[%s3237_s5] sm:$0x1]  ;;  %v2587_v55 = vld [vmem:[#allocation7 + $0x48] ss:$16 sps:$4 sm:$0xff]  }
 0x1e8   : > { %v2381_v24 = vpop.f32.mrf.mxu1  ;;  %1699 = vmatprep.subr.bf16.mxu0 %v2568_v57  ;;  %v2595_v57 = vld [vmem:[#allocation7 + $0x2c] ss:$16 sps:$4 sm:$0xff]  }
 0x1e9   : > { %v811_v25 = vadd.bf16 %v808_v9, %v795_v22  ;;  %v820_v30 = vmax.bf16 %v2824_v26, %v812_v23  ;;  %v996_v23 = vpack.i.b16 %v994_v21, %v994_v21 }
 0x1ea   : > { %v762_v27 = vpop.f32.mrf.mxu1 }
 0x1eb   : > { %v819_v28 = vmax.bf16 %v2824_v26, %v811_v25  ;;  %1700 = vmatpush1.bf16.msra.mxu0 %v2566_v58 }
 0x1ec   : > { %v2382_v29 = vpop.f32.mrf.mxu1  ;;  %1701 = vmatprep.subr.bf16.mxu0 %v2574_v59  ;;  %v2593_v59 = vld [vmem:[#allocation7 + $0x28] ss:$16 sps:$4 sm:$0xff]  }
 0x1ed   : > { %v798_v31 = vpack.c.bf16 %v2382_v29, %v2381_v24  ;;  %2407 = vmatprep.mubr.bf16.mxu0 %v819_v28 }
 0x1ee   : > { %v765_v32 = vpop.f32.mrf.mxu1  ;;  %2408 = vmatmul.mubr.bf16.gmra.mxu0 %v820_v30 }
 0x1ef   : > { %v814_v33 = vadd.bf16 %v808_v9, %v798_v31  ;;  %v797_v34 = vpack.c.bf16 %v765_v32, %v762_v27  ;;  %1702 = vmatpush1.bf16.msra.mxu0 %v2572_v60  ;;  %v3093_v27 = vrot.slane %v996_v23, %v3060_v6  ;;  %v2557_v32 = vld [vmem:[#allocation7 + $0xe8] ss:$16 sps:$4 sm:$0xff]  }
 0x1f0   : > { %v2385_v35 = vpop.f32.mrf.mxu1  ;;  %1703 = vmatprep.subr.bf16.mxu0 %v2580_v61  ;;  %v2629_v23 = vld [vmem:[#allocation7 + $0x168] ss:$16 sps:$4 sm:$0xff]  }
 0x1f1   : > { %v813_v36 = vadd.bf16 %v808_v9, %v797_v34  ;;  %v822_v38 = vmax.bf16 %v2824_v26, %v814_v33 }
 0x1f2   : > { %v778_v37 = vpop.f32.mrf.mxu1 }
 0x1f3   : > { %v821_v39 = vmax.bf16 %v2824_v26, %v813_v36  ;;  %1704 = vmatpush1.bf16.msra.mxu0 %v2578_v62  ;;  %v2601_v62 = vld [vmem:[#allocation7 + $0xc] ss:$16 sps:$4 sm:$0xff]  }
 0x1f4   : > { %v2386_v40 = vpop.f32.mrf.mxu1  ;;  %1705 = vmatprep.subr.bf16.mxu0 %v2586_v63 }
 0x1f5   : > { %2411 = vmatprep.mubr.bf16.mxu0 %v821_v39  ;;  %v800_v41 = vpack.c.bf16 %v2386_v40, %v2385_v35  ;;  %v2565_v35 = vld [vmem:[#allocation7 + $0xcc] ss:$16 sps:$4 sm:$0xff]  }
 0x1f6   : > { %2412 = vmatmul.mubr.bf16.gmra.mxu0 %v822_v38  ;;  %v781_v42 = vpop.f32.mrf.mxu1  ;;  %v2571_v39 = vld [vmem:[#allocation7 + $0xac] ss:$16 sps:$4 sm:$0xff]  }
 0x1f7   : > { %v816_v43 = vadd.bf16 %v808_v9, %v800_v41  ;;  %v799_v44 = vpack.c.bf16 %v781_v42, %v778_v37  ;;  %1706 = vmatpush1.bf16.msra.mxu0 %v2584_v0  ;;  %v2563_v37 = vld [vmem:[#allocation7 + $0xc8] ss:$16 sps:$4 sm:$0xff]  }
 0x1f8   : > { %1707 = vmatprep.subr.bf16.mxu0 %v2592_v3  ;;  %v2569_v41 = vld [vmem:[#allocation7 + $0xa8] ss:$16 sps:$4 sm:$0xff]  }
 0x1f9   : > { %v815_v45 = vadd.bf16 %v808_v9, %v799_v44  ;;  %v824_v46 = vmax.bf16 %v2824_v26, %v816_v43  ;;  %v2602_v9 = vld [vmem:[#allocation7] ss:$16 sps:$4 sm:$0xff]   ;;  %v2577_v44 = vld [vmem:[#allocation7 + $0x8c] ss:$16 sps:$4 sm:$0xff]   ;;  %v2599_v0 = vld [vmem:[#allocation7 + $0x8] ss:$16 sps:$4 sm:$0xff]  }
 0x1fb   : > { %v823_v47 = vmax.bf16 %v2824_v26, %v815_v45  ;;  %1708 = vmatpush1.bf16.msra.mxu0 %v2590_v4  ;;  %v2607_v4 = vld [vmem:[#allocation7 + $0x1ec] ss:$16 sps:$4 sm:$0xff]  }
 0x1fc   : > { %1709 = vmatprep.subr.bf16.mxu0 %v2598_v5 }
 0x1fd   : > { %2415 = vmatprep.mubr.bf16.mxu0 %v823_v47 }
 0x1fe   : > { %2416 = vmatmul.mubr.bf16.gmra.mxu0 %v824_v46  ;;  %v2575_v46 = vld [vmem:[#allocation7 + $0x88] ss:$16 sps:$4 sm:$0xff]  }
 0x1ff   : > { %1710 = vmatpush1.bf16.msra.mxu0 %v2596_v7  ;;  %v2605_v7 = vld [vmem:[#allocation7 + $0x1e8] ss:$16 sps:$4 sm:$0xff]  }
 0x200   : > { %1711 = vmatprep.subr.bf16.mxu0 %v2604_v8 }
 0x203   : > { %1712 = vmatpush1.bf16.msra.mxu0 %v2602_v9 }
 0x204   : > { %1713 = vmatprep.subr.bf16.mxu0 %v2610_v10  ;;  %v2613_v10 = vld [vmem:[#allocation7 + $0x1cc] ss:$16 sps:$4 sm:$0xff]  }
 0x207   : > { %1714 = vmatpush2.bf16.msra.mxu0 %v2608_v11 }
 0x208   : > { %1715 = vmatprep.subr.bf16.mxu0 %v2616_v12  ;;  %v2611_v12 = vld [vmem:[#allocation7 + $0x1c8] ss:$16 sps:$4 sm:$0xff]  }
 0x20b   : > { %1716 = vmatpush2.bf16.msra.mxu0 %v2614_v13 }
 0x20c   : > { %1717 = vmatprep.subr.bf16.mxu0 %v2622_v14  ;;  %v2619_v14 = vld [vmem:[#allocation7 + $0x1ac] ss:$16 sps:$4 sm:$0xff]  }
 0x20f   : > { %1718 = vmatpush2.bf16.msra.mxu0 %v2620_v15 }
 0x210   : > { %1719 = vmatprep.subr.bf16.mxu0 %v2628_v16  ;;  %v2617_v16 = vld [vmem:[#allocation7 + $0x1a8] ss:$16 sps:$4 sm:$0xff]  }
 0x213   : > { %1720 = vmatpush2.bf16.msra.mxu0 %v2626_v17 }
 0x214   : > { %1721 = vmatprep.subr.bf16.mxu0 %v2634_v18 }
 0x217   : > { %1722 = vmatpush2.bf16.msra.mxu0 %v2632_v19  ;;  %v2625_v19 = vld [vmem:[#allocation7 + $0x18c] ss:$16 sps:$4 sm:$0xff]  }
 0x2a6   : > { %v2405_v20 = vpop.f32.mrf.mxu0 }
 0x2a8   : > { %v923_v22 = vpop.f32.mrf.mxu0 }
 0x2aa   : > { %v2406_v24 = vpop.f32.mrf.mxu0 }
 0x2ab   : > { %v987_v33 = vpack.c.bf16 %v2406_v24, %v2405_v20  ;;  %v2623_v20 = vld [vmem:[#allocation7 + $0x188] ss:$16 sps:$4 sm:$0xff]  }
 0x2ac   : > { %v926_v25 = vpop.f32.mrf.mxu0 }
 0x2ad   : > { %v986_v28 = vpack.c.bf16 %v926_v25, %v923_v22  ;;  %v1003_v38 = vadd.bf16 %v3093_v27, %v987_v33  ;;  %v2631_v22 = vld [vmem:[#allocation7 + $0x16c] ss:$16 sps:$4 sm:$0xff]   ;;  %v2638_v33 = vld [vmem:[#allocation7 + $0x140] ss:$16 sps:$4 sm:$0xff]  }
 0x2ae   : > { %v2409_v29 = vpop.f32.mrf.mxu0 }
 0x2af   : > { %v1002_v30 = vadd.bf16 %v3093_v27, %v986_v28  ;;  %v1011_v43 = vmax.bf16 %v2824_v26, %v1003_v38  ;;  %v2652_v38 = vld [vmem:[#allocation7 + $0x104] ss:$16 sps:$4 sm:$0xff]  }
 0x2b0   : > { %v939_v31 = vpop.f32.mrf.mxu0 }
 0x2b1   : > { %v1010_v34 = vmax.bf16 %v2824_v26, %v1002_v30  ;;  %v2635_v30 = vld [vmem:[#allocation7 + $0x148] ss:$16 sps:$4 sm:$0xff]  }
 0x2b2   : > { %v2410_v36 = vpop.f32.mrf.mxu0 }
 0x2b3   : > { %1147 = vmatmul.mubr.bf16.vlgmr.msra.gmra.mxu1 %v1010_v34  ;;  %v989_v51 = vpack.c.bf16 %v2410_v36, %v2409_v29  ;;  %v2643_v34 = vld [vmem:[#allocation7 + $0x12c] ss:$16 sps:$4 sm:$0xff]   ;;  %v2641_v36 = vld [vmem:[#allocation7 + $0x128] ss:$16 sps:$4 sm:$0xff]  }
 0x2b4   : > { %1156 = vmatprep.mubr.bf16.mxu1 %v2824_v26  ;;  %1811 = vmatpush1.bf16.msra.mxu1 %v2557_v32  ;;  %v942_v40 = vpop.f32.mrf.mxu0  ;;  %v2640_v32 = vld [vmem:[#allocation7 + $0x144] ss:$16 sps:$4 sm:$0xff]  }
 0x2b5   : > { %1812 = vmatprep.subr.bf16.mxu1 %v2565_v35  ;;  %v988_v42 = vpack.c.bf16 %v942_v40, %v939_v31  ;;  %v1005_v56 = vadd.bf16 %v3093_v27, %v989_v51  ;;  %v2637_v31 = vld [vmem:[#allocation7 + $0x14c] ss:$16 sps:$4 sm:$0xff]   ;;  %1723 = vmatprep.subr.bf16.mxu0 %v2640_v32  ;;  %v2646_v35 = vld [vmem:[#allocation7 + $0x124] ss:$16 sps:$4 sm:$0xff]   ;;  %v2650_v40 = vld [vmem:[#allocation7 + $0x100] ss:$16 sps:$4 sm:$0xff]  }
 0x2b6   : > { %v2413_v45 = vpop.f32.mrf.mxu0  ;;  %1724 = vmatpush2.bf16.msra.mxu0 %v2638_v33 }
 0x2b7   : > { %v1004_v47 = vadd.bf16 %v3093_v27, %v988_v42  ;;  %v1013_v61 = vmax.bf16 %v2824_v26, %v1005_v56  ;;  %1725 = vmatprep.subr.bf16.mxu0 %v2646_v35 }
 0x2b8   : > { %1813 = vmatpush1.bf16.msra.mxu1 %v2563_v37  ;;  %v955_v49 = vpop.f32.mrf.mxu0  ;;  %v2644_v37 = vld [vmem:[#allocation7 + $0x120] ss:$16 sps:$4 sm:$0xff]  }
 0x2b9   : > { %1814 = vmatprep.subr.bf16.mxu1 %v2571_v39  ;;  %v1012_v52 = vmax.bf16 %v2824_v26, %v1004_v47  ;;  %v2647_v39 = vld [vmem:[#allocation7 + $0x108] ss:$16 sps:$4 sm:$0xff]  }
 0x2ba   : > { %v2414_v54 = vpop.f32.mrf.mxu0  ;;  %1726 = vmatpush2.bf16.msra.mxu0 %v2644_v37 }
 0x2bb   : > { %1157 = vmatmul.mubr.bf16.gmra.mxu1 %v1011_v43  ;;  %v991_v8 = vpack.c.bf16 %v2414_v54, %v2413_v45  ;;  %1727 = vmatprep.subr.bf16.mxu0 %v2652_v38 }
 0x2bc   : > { %1166 = vmatprep.mubr.bf16.mxu1 %v2824_v26  ;;  %1815 = vmatpush1.bf16.msra.mxu1 %v2569_v41  ;;  %v958_v58 = vpop.f32.mrf.mxu0  ;;  %v2825_v41 = vmov 1966171168  }
 0x2bd   : > { %1816 = vmatprep.subr.bf16.mxu1 %v2577_v44  ;;  %v990_v60 = vpack.c.bf16 %v958_v58, %v955_v49  ;;  %v1007_v13 = vadd.bf16 %v3093_v27, %v991_v8  ;;  %v1254_v42 = vunpack.c.l.s4 %v2825_v41  ;;  %v2236_v44 = vld.sshfl [vmem:[%s3239_s7] sm:$0x11 pattern:$0x75316420] }
 0x2be   : > { %v2417_v63 = vpop.f32.mrf.mxu0  ;;  %1728 = vmatpush2.bf16.msra.mxu0 %v2650_v40 }
 0x2bf   : > { %v1006_v3 = vadd.bf16 %v3093_v27, %v990_v60  ;;  %v1015_v18 = vmax.bf16 %v2824_v26, %v1007_v13  ;;  %v1255_v43 = vunpack.c.0.s8 %v1254_v42 }
 0x2c0   : > { %1817 = vmatpush1.bf16.msra.mxu1 %v2575_v46  ;;  %v971_v5 = vpop.f32.mrf.mxu0  ;;  %v1252_v46 = vcombine.high %v2236_v44, %v2236_v44 }
 0x2c1   : > { %1818 = vmatprep.subr.bf16.mxu1 %v2583_v48  ;;  %v1014_v9 = vmax.bf16 %v2824_v26, %v1006_v3  ;;  %v3122_v45 = vsub.s32 %v1255_v43, %v3054_v2 }
 0x2c2   : > { %v2418_v11 = vpop.f32.mrf.mxu0 }
 0x2c3   : > { %1167 = vmatmul.mubr.bf16.gmra.mxu1 %v1012_v52  ;;  %v993_v24 = vpack.c.bf16 %v2418_v11, %v2417_v63  ;;  %v1259_v47 = vrot.slane %v2236_v44, %v3122_v45  ;;  %v1266_v48 = vrot.slane %v1252_v46, %v3122_v45 }
 0x2c4   : > { %1176 = vmatprep.mubr.bf16.mxu1 %v2824_v26  ;;  %1819 = vmatpush1.bf16.msra.mxu1 %v2581_v50  ;;  %v974_v15 = vpop.f32.mrf.mxu0 }
 0x2c5   : > { %1820 = vmatprep.subr.bf16.mxu1 %v2589_v53  ;;  %v992_v17 = vpack.c.bf16 %v974_v15, %v971_v5  ;;  %v1009_v28 = vadd.bf16 %v3093_v27, %v993_v24  ;;  %v1268_v50 = vpack.i.b16 %v1259_v47, %v1259_v47  ;;  %v1275_v51 = vpack.i.b16 %v1266_v48, %v1266_v48 }
 0x2c7   : > { %v1008_v21 = vadd.bf16 %v3093_v27, %v992_v17  ;;  %v1017_v29 = vmax.bf16 %v2824_v26, %v1009_v28  ;;  %v2649_v27 = vld [vmem:[#allocation7 + $0x10c] ss:$16 sps:$4 sm:$0xff]   ;;  %v3127_v54 = vrot.slane %v1268_v50, %v3060_v6  ;;  %v3130_v56 = vrot.slane %v1275_v51, %v3060_v6 }
 0x2c8   : > { %1821 = vmatpush1.bf16.msra.mxu1 %v2587_v55 }
 0x2c9   : > { %1822 = vmatprep.subr.bf16.mxu1 %v2595_v57  ;;  %v1016_v25 = vmax.bf16 %v2824_v26, %v1008_v21 }
 0x2cb   : > { %1177 = vmatmul.mubr.bf16.gmra.mxu1 %v1013_v61 }
 0x2cc   : > { %1186 = vmatprep.mubr.bf16.mxu1 %v2824_v26  ;;  %1823 = vmatpush1.bf16.msra.mxu1 %v2593_v59 }
 0x2cd   : > { %1824 = vmatprep.subr.bf16.mxu1 %v2601_v62 }
 0x2d0   : > { %1825 = vmatpush1.bf16.msra.mxu1 %v2599_v0 }
 0x2d1   : > { %1826 = vmatprep.subr.bf16.mxu1 %v2607_v4 }
 0x2d3   : > { %1187 = vmatmul.mubr.bf16.gmra.mxu1 %v1014_v9 }
 0x2d4   : > { %1196 = vmatprep.mubr.bf16.mxu1 %v2824_v26  ;;  %1827 = vmatpush2.bf16.msra.mxu1 %v2605_v7 }
 0x2d5   : > { %1828 = vmatprep.subr.bf16.mxu1 %v2613_v10 }
 0x2d8   : > { %1829 = vmatpush2.bf16.msra.mxu1 %v2611_v12 }
 0x2d9   : > { %1830 = vmatprep.subr.bf16.mxu1 %v2619_v14 }
 0x2db   : > { %1197 = vmatmul.mubr.bf16.gmra.mxu1 %v1015_v18 }
 0x2dc   : > { %1206 = vmatprep.mubr.bf16.mxu1 %v2824_v26  ;;  %1831 = vmatpush2.bf16.msra.mxu1 %v2617_v16 }
 0x2dd   : > { %1832 = vmatprep.subr.bf16.mxu1 %v2625_v19 }
 0x2e0   : > { %1833 = vmatpush2.bf16.msra.mxu1 %v2623_v20 }
 0x2e1   : > { %1834 = vmatprep.subr.bf16.mxu1 %v2631_v22 }
 0x2e3   : > { %1207 = vmatmul.mubr.bf16.gmra.mxu1 %v1016_v25 }
 0x2e4   : > { %1216 = vmatprep.mubr.bf16.mxu1 %v2824_v26  ;;  %1835 = vmatpush2.bf16.msra.mxu1 %v2629_v23 }
 0x2e5   : > { %1836 = vmatprep.subr.bf16.mxu1 %v2637_v31 }
 0x2e8   : > { %1837 = vmatpush2.bf16.msra.mxu1 %v2635_v30 }
 0x2e9   : > { %1838 = vmatprep.subr.bf16.mxu1 %v2643_v34 }
 0x2eb   : > { %1217 = vmatmul.mubr.bf16.gmra.mxu1 %v1017_v29 }
 0x2ec   : > { %1839 = vmatpush2.bf16.msra.mxu1 %v2641_v36 }
 0x2ed   : > { %1840 = vmatprep.subr.bf16.mxu1 %v2649_v27 }
 0x2f0   : > { %1841 = vmatpush2.bf16.msra.mxu1 %v2647_v39 }
 0x373   : > { %v1148_v49 = vpop.f32.mrf.mxu1 }
 0x375   : > { %v1150_v52 = vpop.f32.mrf.mxu1 }
 0x377   : > { %v1152_v53 = vpop.f32.mrf.mxu1 }
 0x378   : > { %v1227_v55 = vpack.c.bf16 %v1152_v53, %v1148_v49 }
 0x379   : > { %v1154_v57 = vpop.f32.mrf.mxu1 }
 0x37a   : > { %v1228_v2 = vpack.c.bf16 %v1154_v57, %v1150_v52  ;;  %v1281_v58 = vadd.bf16 %v3127_v54, %v1227_v55 }
 0x37b   : > { %v1158_v59 = vpop.f32.mrf.mxu1 }
 0x37c   : > { %v1282_v60 = vadd.bf16 %v3130_v56, %v1228_v2  ;;  %v1297_v63 = vmax.bf16 %v2824_v26, %v1281_v58 }
 0x37d   : > { %v1160_v61 = vpop.f32.mrf.mxu1 }
 0x37e   : > { %v1298_v62 = vmax.bf16 %v2824_v26, %v1282_v60 }
 0x37f   : > { %v1162_v0 = vpop.f32.mrf.mxu1 }
 0x380   : > { %v1229_v3 = vpack.c.bf16 %v1162_v0, %v1158_v59  ;;  %1729 = vmatprep.mubr.bf16.mxu0 %v1298_v62  ;;  %1842 = vmatprep.mubr.bf16.mxu1 %v1298_v62 }
 0x381   : > { %v1164_v4 = vpop.f32.mrf.mxu1  ;;  %1730 = vmatmul.mubr.bf16.vlgmr.msra.gmra.mxu0 %v1297_v63  ;;  %1843 = vmatmul.mubr.bf16.vlgmr.msra.gmra.mxu1 %v1297_v63 }
 0x382   : > { %v1230_v6 = vpack.c.bf16 %v1164_v4, %v1160_v61  ;;  %v1283_v5 = vadd.bf16 %v3127_v54, %v1229_v3 }
 0x383   : > { %v1168_v7 = vpop.f32.mrf.mxu1 }
 0x384   : > { %v1284_v8 = vadd.bf16 %v3130_v56, %v1230_v6  ;;  %v1299_v12 = vmax.bf16 %v2824_v26, %v1283_v5 }
 0x385   : > { %v1170_v9 = vpop.f32.mrf.mxu1 }
 0x386   : > { %v1300_v10 = vmax.bf16 %v2824_v26, %v1284_v8 }
 0x387   : > { %v1172_v11 = vpop.f32.mrf.mxu1 }
 0x388   : > { %v1231_v13 = vpack.c.bf16 %v1172_v11, %v1168_v7  ;;  %1739 = vmatprep.mubr.bf16.mxu0 %v1300_v10  ;;  %1852 = vmatprep.mubr.bf16.mxu1 %v1300_v10 }
 0x389   : > { %v1174_v14 = vpop.f32.mrf.mxu1  ;;  %1740 = vmatmul.mubr.bf16.gmra.mxu0 %v1299_v12  ;;  %1853 = vmatmul.mubr.bf16.gmra.mxu1 %v1299_v12 }
 0x38a   : > { %v1232_v15 = vpack.c.bf16 %v1174_v14, %v1170_v9  ;;  %v1285_v16 = vadd.bf16 %v3127_v54, %v1231_v13 }
 0x38b   : > { %v1178_v17 = vpop.f32.mrf.mxu1 }
 0x38c   : > { %v1286_v18 = vadd.bf16 %v3130_v56, %v1232_v15  ;;  %v1301_v22 = vmax.bf16 %v2824_v26, %v1285_v16 }
 0x38d   : > { %v1180_v19 = vpop.f32.mrf.mxu1 }
 0x38e   : > { %v1302_v20 = vmax.bf16 %v2824_v26, %v1286_v18 }
 0x38f   : > { %v1182_v21 = vpop.f32.mrf.mxu1 }
 0x390   : > { %v1233_v23 = vpack.c.bf16 %v1182_v21, %v1178_v17  ;;  %1749 = vmatprep.mubr.bf16.mxu0 %v1302_v20  ;;  %1862 = vmatprep.mubr.bf16.mxu1 %v1302_v20 }
 0x391   : > { %v1184_v24 = vpop.f32.mrf.mxu1  ;;  %1750 = vmatmul.mubr.bf16.gmra.mxu0 %v1301_v22  ;;  %1863 = vmatmul.mubr.bf16.gmra.mxu1 %v1301_v22 }
 0x392   : > { %v1234_v25 = vpack.c.bf16 %v1184_v24, %v1180_v19  ;;  %v1287_v28 = vadd.bf16 %v3127_v54, %v1233_v23 }
 0x393   : > { %v1188_v29 = vpop.f32.mrf.mxu1 }
 0x394   : > { %v1288_v30 = vadd.bf16 %v3130_v56, %v1234_v25  ;;  %v1303_v34 = vmax.bf16 %v2824_v26, %v1287_v28 }
 0x395   : > { %v1190_v31 = vpop.f32.mrf.mxu1 }
 0x396   : > { %v1304_v32 = vmax.bf16 %v2824_v26, %v1288_v30 }
 0x397   : > { %v1192_v33 = vpop.f32.mrf.mxu1 }
 0x398   : > { %v1235_v35 = vpack.c.bf16 %v1192_v33, %v1188_v29  ;;  %1759 = vmatprep.mubr.bf16.mxu0 %v1304_v32  ;;  %1872 = vmatprep.mubr.bf16.mxu1 %v1304_v32 }
 0x399   : > { %v1194_v36 = vpop.f32.mrf.mxu1  ;;  %1760 = vmatmul.mubr.bf16.gmra.mxu0 %v1303_v34  ;;  %1873 = vmatmul.mubr.bf16.gmra.mxu1 %v1303_v34 }
 0x39a   : > { %v1236_v37 = vpack.c.bf16 %v1194_v36, %v1190_v31  ;;  %v1289_v27 = vadd.bf16 %v3127_v54, %v1235_v35 }
 0x39b   : > { %v1198_v38 = vpop.f32.mrf.mxu1 }
 0x39c   : > { %v1290_v39 = vadd.bf16 %v3130_v56, %v1236_v37  ;;  %v1305_v43 = vmax.bf16 %v2824_v26, %v1289_v27 }
 0x39d   : > { %v1200_v40 = vpop.f32.mrf.mxu1 }
 0x39e   : > { %v1306_v41 = vmax.bf16 %v2824_v26, %v1290_v39 }
 0x39f   : > { %v1202_v42 = vpop.f32.mrf.mxu1 }
 0x3a0   : > { %v1237_v44 = vpack.c.bf16 %v1202_v42, %v1198_v38  ;;  %1769 = vmatprep.mubr.bf16.mxu0 %v1306_v41  ;;  %1882 = vmatprep.mubr.bf16.mxu1 %v1306_v41 }
 0x3a1   : > { %v1204_v46 = vpop.f32.mrf.mxu1  ;;  %1770 = vmatmul.mubr.bf16.gmra.mxu0 %v1305_v43  ;;  %1883 = vmatmul.mubr.bf16.gmra.mxu1 %v1305_v43 }
 0x3a2   : > { %v1238_v47 = vpack.c.bf16 %v1204_v46, %v1200_v40  ;;  %v1291_v48 = vadd.bf16 %v3127_v54, %v1237_v44 }
 0x3a3   : > { %v1208_v49 = vpop.f32.mrf.mxu1 }
 0x3a4   : > { %v1292_v50 = vadd.bf16 %v3130_v56, %v1238_v47  ;;  %v1307_v55 = vmax.bf16 %v2824_v26, %v1291_v48 }
 0x3a5   : > { %v1210_v51 = vpop.f32.mrf.mxu1 }
 0x3a6   : > { %v1308_v52 = vmax.bf16 %v2824_v26, %v1292_v50 }
 0x3a7   : > { %v1212_v53 = vpop.f32.mrf.mxu1 }
 0x3a8   : > { %v1239_v57 = vpack.c.bf16 %v1212_v53, %v1208_v49  ;;  %1779 = vmatprep.mubr.bf16.mxu0 %v1308_v52  ;;  %1892 = vmatprep.mubr.bf16.mxu1 %v1308_v52 }
 0x3a9   : > { %v1214_v2 = vpop.f32.mrf.mxu1  ;;  %1780 = vmatmul.mubr.bf16.gmra.mxu0 %v1307_v55  ;;  %1893 = vmatmul.mubr.bf16.gmra.mxu1 %v1307_v55 }
 0x3aa   : > { %v1240_v58 = vpack.c.bf16 %v1214_v2, %v1210_v51  ;;  %v1293_v59 = vadd.bf16 %v3127_v54, %v1239_v57 }
 0x3ab   : > { %v1218_v60 = vpop.f32.mrf.mxu1 }
 0x3ac   : > { %v1294_v61 = vadd.bf16 %v3130_v56, %v1240_v58  ;;  %v1309_v3 = vmax.bf16 %v2824_v26, %v1293_v59 }
 0x3ad   : > { %v1220_v62 = vpop.f32.mrf.mxu1 }
 0x3ae   : > { %v1310_v63 = vmax.bf16 %v2824_v26, %v1294_v61 }
 0x3af   : > { %v1222_v0 = vpop.f32.mrf.mxu1 }
 0x3b0   : > { %v1241_v4 = vpack.c.bf16 %v1222_v0, %v1218_v60  ;;  %1789 = vmatprep.mubr.bf16.mxu0 %v1310_v63  ;;  %1902 = vmatprep.mubr.bf16.mxu1 %v1310_v63 }
 0x3b1   : > { %v1224_v6 = vpop.f32.mrf.mxu1  ;;  %1790 = vmatmul.mubr.bf16.gmra.mxu0 %v1309_v3  ;;  %1903 = vmatmul.mubr.bf16.gmra.mxu1 %v1309_v3 }
 0x3b2   : > { %v1242_v5 = vpack.c.bf16 %v1224_v6, %v1220_v62  ;;  %v1295_v7 = vadd.bf16 %v3127_v54, %v1241_v4  ;;  %v2826_v54 = vmov -inf  }
 0x3b3   : > { %439 = vst.msk [vmem:[%s3172_s29] sm:$0xf] %vm3168_vm3, %v2826_v54 }
 0x3b4   : > { %v1296_v8 = vadd.bf16 %v3130_v56, %v1242_v5  ;;  %v1311_v10 = vmax.bf16 %v2824_v26, %v1295_v7 }
 0x3b6   : > { %v1312_v9 = vmax.bf16 %v2824_v26, %v1296_v8 }
 0x3b8   : > { %1799 = vmatprep.mubr.bf16.mxu0 %v1312_v9  ;;  %1912 = vmatprep.mubr.bf16.mxu1 %v1312_v9 }
 0x3b9   : > { %1800 = vmatmul.mubr.bf16.gmra.mxu0 %v1311_v10  ;;  %1913 = vmatmul.mubr.bf16.gmra.mxu1 %v1311_v10 }
 0x441   : > { %v1731_v26 = vpop.f32.mrf.mxu0  ;;  %v1844_v56 = vpop.f32.mrf.mxu1 }
 0x443   : > { %v1733_v12 = vpop.f32.mrf.mxu0  ;;  %v1846_v13 = vpop.f32.mrf.mxu1 }
 0x445   : > { %v1735_v14 = vpop.f32.mrf.mxu0  ;;  %v1848_v15 = vpop.f32.mrf.mxu1 }
 0x446   : > { %v1923_v44 = vmax.f32 %v1731_v26, %v1735_v14  ;;  %v1965_v46 = vmax.f32 %v1844_v56, %v1848_v15 }
 0x447   : > { %v1737_v16 = vpop.f32.mrf.mxu0  ;;  %v1850_v17 = vpop.f32.mrf.mxu1 }
 0x448   : > { %v1944_v49 = vmax.f32 %v1733_v12, %v1737_v16  ;;  %v1986_v50 = vmax.f32 %v1846_v13, %v1850_v17 }
 0x449   : > { %v1741_v18 = vpop.f32.mrf.mxu0  ;;  %v1854_v1 = vpop.f32.mrf.mxu1 }
 0x44a   : > { %v1924_v51 = vmax.f32 %v1923_v44, %v1741_v18  ;;  %v1966_v52 = vmax.f32 %v1965_v46, %v1854_v1 }
 0x44b   : > { %v1743_v19 = vpop.f32.mrf.mxu0  ;;  %v1856_v20 = vpop.f32.mrf.mxu1 }
 0x44c   : > { %v1945_v57 = vmax.f32 %v1944_v49, %v1743_v19  ;;  %v1987_v2 = vmax.f32 %v1986_v50, %v1856_v20 }
 0x44d   : > { %v1745_v21 = vpop.f32.mrf.mxu0  ;;  %v1858_v22 = vpop.f32.mrf.mxu1 }
 0x44e   : > { %v1925_v58 = vmax.f32 %v1924_v51, %v1745_v21  ;;  %v1967_v59 = vmax.f32 %v1966_v52, %v1858_v22 }
 0x44f   : > { %v1747_v23 = vpop.f32.mrf.mxu0  ;;  %v1860_v24 = vpop.f32.mrf.mxu1 }
 0x450   : > { %v1946_v62 = vmax.f32 %v1945_v57, %v1747_v23  ;;  %v1988_v63 = vmax.f32 %v1987_v2, %v1860_v24 }
 0x451   : > { %v1751_v25 = vpop.f32.mrf.mxu0  ;;  %v1864_v28 = vpop.f32.mrf.mxu1 }
 0x452   : > { %v1926_v0 = vmax.f32 %v1925_v58, %v1751_v25  ;;  %v1968_v3 = vmax.f32 %v1967_v59, %v1864_v28 }
 0x453   : > { %v1753_v29 = vpop.f32.mrf.mxu0  ;;  %v1866_v30 = vpop.f32.mrf.mxu1 }
 0x454   : > { %v1947_v5 = vmax.f32 %v1946_v62, %v1753_v29  ;;  %v1989_v7 = vmax.f32 %v1988_v63, %v1866_v30 }
 0x455   : > { %v1755_v31 = vpop.f32.mrf.mxu0  ;;  %v1868_v32 = vpop.f32.mrf.mxu1 }
 0x456   : > { %v1927_v8 = vmax.f32 %v1926_v0, %v1755_v31  ;;  %v1969_v9 = vmax.f32 %v1968_v3, %v1868_v32 }
 0x457   : > { %v1757_v33 = vpop.f32.mrf.mxu0  ;;  %v1870_v34 = vpop.f32.mrf.mxu1 }
 0x458   : > { %v1948_v26 = vmax.f32 %v1947_v5, %v1757_v33  ;;  %v1990_v56 = vmax.f32 %v1989_v7, %v1870_v34 }
 0x459   : > { %v1761_v35 = vpop.f32.mrf.mxu0  ;;  %v1874_v36 = vpop.f32.mrf.mxu1 }
 0x45a   : > { %v1928_v12 = vmax.f32 %v1927_v8, %v1761_v35  ;;  %v1970_v13 = vmax.f32 %v1969_v9, %v1874_v36 }
 0x45b   : > { %v1763_v37 = vpop.f32.mrf.mxu0  ;;  %v1876_v27 = vpop.f32.mrf.mxu1 }
 0x45c   : > { %v1949_v16 = vmax.f32 %v1948_v26, %v1763_v37  ;;  %v1991_v17 = vmax.f32 %v1990_v56, %v1876_v27 }
 0x45d   : > { %v1765_v38 = vpop.f32.mrf.mxu0  ;;  %v1878_v39 = vpop.f32.mrf.mxu1 }
 0x45e   : > { %v1929_v18 = vmax.f32 %v1928_v12, %v1765_v38  ;;  %v1971_v1 = vmax.f32 %v1970_v13, %v1878_v39 }
 0x45f   : > { %v1767_v40 = vpop.f32.mrf.mxu0  ;;  %v1880_v41 = vpop.f32.mrf.mxu1 }
 0x460   : > { %v1950_v21 = vmax.f32 %v1949_v16, %v1767_v40  ;;  %v1992_v22 = vmax.f32 %v1991_v17, %v1880_v41 }
 0x461   : > { %v1771_v42 = vpop.f32.mrf.mxu0  ;;  %v1884_v43 = vpop.f32.mrf.mxu1 }
 0x462   : > { %v1930_v23 = vmax.f32 %v1929_v18, %v1771_v42  ;;  %v1972_v24 = vmax.f32 %v1971_v1, %v1884_v43 }
 0x463   : > { %v1773_v47 = vpop.f32.mrf.mxu0  ;;  %v1886_v48 = vpop.f32.mrf.mxu1 }
 0x464   : > { %v1951_v29 = vmax.f32 %v1950_v21, %v1773_v47  ;;  %v1993_v30 = vmax.f32 %v1992_v22, %v1886_v48 }
 0x465   : > { %v1775_v53 = vpop.f32.mrf.mxu0  ;;  %v1888_v55 = vpop.f32.mrf.mxu1 }
 0x466   : > { %v1931_v31 = vmax.f32 %v1930_v23, %v1775_v53  ;;  %v1973_v32 = vmax.f32 %v1972_v24, %v1888_v55 }
 0x467   : > { %v1777_v60 = vpop.f32.mrf.mxu0  ;;  %v1890_v61 = vpop.f32.mrf.mxu1 }
 0x468   : > { %v1952_v35 = vmax.f32 %v1951_v29, %v1777_v60  ;;  %v1994_v36 = vmax.f32 %v1993_v30, %v1890_v61 }
 0x469   : > { %v1781_v4 = vpop.f32.mrf.mxu0  ;;  %v1894_v6 = vpop.f32.mrf.mxu1 }
 0x46a   : > { %v1932_v37 = vmax.f32 %v1931_v31, %v1781_v4  ;;  %v1974_v27 = vmax.f32 %v1973_v32, %v1894_v6 }
 0x46b   : > { %v1783_v10 = vpop.f32.mrf.mxu0  ;;  %v1896_v54 = vpop.f32.mrf.mxu1 }
 0x46c   : > { %v1953_v44 = vmax.f32 %v1952_v35, %v1783_v10  ;;  %v1995_v46 = vmax.f32 %v1994_v36, %v1896_v54 }
 0x46d   : > { %v1785_v14 = vpop.f32.mrf.mxu0  ;;  %v1898_v15 = vpop.f32.mrf.mxu1 }
 0x46e   : > { %v1933_v40 = vmax.f32 %v1932_v37, %v1785_v14  ;;  %v1975_v41 = vmax.f32 %v1974_v27, %v1898_v15 }
 0x46f   : > { %v1787_v19 = vpop.f32.mrf.mxu0  ;;  %v1900_v20 = vpop.f32.mrf.mxu1 }
 0x470   : > { %v1954_v49 = vmax.f32 %v1953_v44, %v1787_v19  ;;  %v1996_v50 = vmax.f32 %v1995_v46, %v1900_v20 }
 0x471   : > { %v1791_v25 = vpop.f32.mrf.mxu0  ;;  %v1904_v28 = vpop.f32.mrf.mxu1 }
 0x472   : > { %v1934_v47 = vmax.f32 %v1933_v40, %v1791_v25  ;;  %v1976_v48 = vmax.f32 %v1975_v41, %v1904_v28  ;;  %v2047_v40 = vld [vmem:[%s3241_s9] sm:$0xf] }
 0x473   : > { %v1793_v33 = vpop.f32.mrf.mxu0  ;;  %v1906_v34 = vpop.f32.mrf.mxu1 }
 0x474   : > { %v1955_v53 = vmax.f32 %v1954_v49, %v1793_v33  ;;  %v1997_v55 = vmax.f32 %v1996_v50, %v1906_v34 }
 0x475   : > { %v1795_v38 = vpop.f32.mrf.mxu0  ;;  %v1908_v39 = vpop.f32.mrf.mxu1 }
 0x476   : > { %v1935_v57 = vmax.f32 %v1934_v47, %v1795_v38  ;;  %v1977_v2 = vmax.f32 %v1976_v48, %v1908_v39  ;;  %v2007_v39 = vld [vmem:[%s3172_s29] sm:$0xf] }
 0x477   : > { %v1797_v42 = vpop.f32.mrf.mxu0  ;;  %v1910_v43 = vpop.f32.mrf.mxu1 }
 0x478   : > { %v1956_v60 = vmax.f32 %v1955_v53, %v1797_v42  ;;  %v1998_v61 = vmax.f32 %v1997_v55, %v1910_v43 }
 0x479   : > { %v1801_v51 = vpop.f32.mrf.mxu0  ;;  %v1914_v52 = vpop.f32.mrf.mxu1 }
 0x47a   : > { %v1936_v62 = vmax.f32 %v1935_v57, %v1801_v51  ;;  %v1978_v63 = vmax.f32 %v1977_v2, %v1914_v52 }
 0x47b   : > { %v1803_v58 = vpop.f32.mrf.mxu0  ;;  %v1916_v59 = vpop.f32.mrf.mxu1 }
 0x47c   : > { %v1957_v4 = vmax.f32 %v1956_v60, %v1803_v58  ;;  %v1999_v6 = vmax.f32 %v1998_v61, %v1916_v59 }
 0x47d   : > { %v1805_v0 = vpop.f32.mrf.mxu0  ;;  %v1918_v3 = vpop.f32.mrf.mxu1 }
 0x47e   : > { %v1937_v5 = vmax.f32 %v1936_v62, %v1805_v0  ;;  %v1979_v7 = vmax.f32 %v1978_v63, %v1918_v3 }
 0x47f   : > { %v1807_v8 = vpop.f32.mrf.mxu0  ;;  %v1920_v9 = vpop.f32.mrf.mxu1 }
 0x480   : > { %v1938_v10 = vrot.slane %v1937_v5, 4  ;;  %v1980_v54 = vrot.slane %v1979_v7, 4  ;;  %v1958_v26 = vmax.f32 %v1957_v4, %v1807_v8  ;;  %v2000_v56 = vmax.f32 %v1999_v6, %v1920_v9 }
 0x482   : > { %v1939_v12 = vmax.f32 %v1937_v5, %v1938_v10  ;;  %v1981_v13 = vmax.f32 %v1979_v7, %v1980_v54  ;;  %v1959_v14 = vrot.slane %v1958_v26, 4  ;;  %v2001_v15 = vrot.slane %v2000_v56, 4 }
 0x484   : > { %v1940_v16 = vrot.slane %v1939_v12, 2  ;;  %v1982_v17 = vrot.slane %v1981_v13, 2  ;;  %v1960_v18 = vmax.f32 %v1958_v26, %v1959_v14  ;;  %v2002_v1 = vmax.f32 %v2000_v56, %v2001_v15 }
 0x486   : > { %v1941_v19 = vmax.f32 %v1939_v12, %v1940_v16  ;;  %v1983_v20 = vmax.f32 %v1981_v13, %v1982_v17  ;;  %v1961_v21 = vrot.slane %v1960_v18, 2  ;;  %v2003_v22 = vrot.slane %v2002_v1, 2 }
 0x488   : > { %v1942_v23 = vrot.slane %v1941_v19, 1  ;;  %v1984_v24 = vrot.slane %v1983_v20, 1  ;;  %v1962_v25 = vmax.f32 %v1960_v18, %v1961_v21  ;;  %v2004_v28 = vmax.f32 %v2002_v1, %v2003_v22 }
 0x48a   : > { %v1963_v29 = vrot.slane %v1962_v25, 1  ;;  %v2005_v30 = vrot.slane %v2004_v28, 1  ;;  %v1943_v31 = vmax.f32 %v1941_v19, %v1942_v23  ;;  %v1985_v32 = vmax.f32 %v1983_v20, %v1984_v24 }
 0x48c   : > { %v1964_v33 = vmax.f32 %v1962_v25, %v1963_v29  ;;  %v2006_v34 = vmax.f32 %v2004_v28, %v2005_v30 }
 0x48e   : > { %v2012_v35 = vcombine.low %v1943_v31, %v1964_v33  ;;  %v2013_v36 = vcombine.low %v1985_v32, %v2006_v34 }
 0x490   : > { %v2020_v37 = vrot.slane %v2012_v35, %v3122_v45  ;;  %v2027_v27 = vrot.slane %v2013_v36, %v3122_v45 }
 0x492   : > { %v2028_v38 = vcombine.low %v2020_v37, %v2027_v27 }
 0x494   : > { %v2035_v44 = vrot.slane %v2028_v38, %v3122_v45 }
 0x496   : > { %v2037_v46 = vmax.f32 %v2007_v39, %v2035_v44 }
 0x498   : > { %2042 = vst.msk [vmem:[%s3172_s29] sm:$0xf] %vm3168_vm3, %v2037_v46 }
 0x49f   : > { %v2046_v41 = vld [vmem:[%s3172_s29] sm:$0xf] }
 0x4a0   : > { %v2048_v42 = vadd.f32 %v2047_v40, %v2046_v41 }
 0x4a2   : > { %v2049_v43 = vmax.f32 %v2048_v42, 0.0 }
 0x4a4   : > { %2050 = vst.msk [vmem:[%s3172_s29] sm:$0xf] %vm3168_vm3, %v2049_v43 }
 0x4a5   : > { %2744 = shalt.err (!%p2741_p9)
}
 0x4a6   : > { %s2745_s12 = scalar_lea.hbm %s2064_s27, 64  ;;  %s2749_s21 = scalar_lea.hbm %s3242_s10, 128 }
 0x4a7   : > { %p2746_p12 = scmp.ne.s32.totalorder %s2064_s27, %s2745_s12  ;;  %p2750_p2 = scmp.lt.s32.totalorder %s2064_s27, %s3242_s10 }
 0x4a8   : > { %p2751_p5 = scmp.lt.s32.totalorder %s2749_s21, %s2745_s12 }
 0x4a9   : > { %p2747_p1 = pnand %p2746_p12, %p2923_p4 }
 0x4aa   : > { %p2752_p0 = por %p2751_p5, %p2750_p2 }
 0x4ab   : > { %p2748_p8 = pneg %p2747_p1 }
 0x4ad   : > { %p2753_p10 = pnand %p2752_p0, %p2748_p8 }
 0x4af   : > { %2756 = shalt.err (!%p2753_p10)
}
 0x4b0   : > { %2432 = dma.vmem_to_hbm [thread:$0]  (%p2923_p4), %s2067_s20, 64, %s2064_s27, %s2052_s22  }
 0x4b1 PF: > { %p2454_p11 = scmp.ge.s32.totalorder %s2815_s18, 2  ;;  %s2078_s4 = sand.u32 1, %s2795_s13  }
 0x4b2   : > { %p3256_p13 = scmp.ne.s32.totalorder %s3249_s25, 0  ;;  %s2079_s24 = scalar_lea.sflag [#allocation4], %s2078_s4 }
 0x4b4   : > { %p2445_p3 = pnand %p2454_p11, %p3256_p13 }
 0x4b6   : > { %p2446_p6 = pneg %p2445_p3 }
 0x4b8   : > { %2790 = dma.done.wait (%p2446_p6), %s2079_s24, 64  }
 0x4b9   : > { %2792 = vsyncadd (%p2446_p6), %s2079_s24, 4294967232  ;;  %s25_s18 = sadd.s32 1, %s2815_s18   ;;  %s3257_s16 = sld [smem:[#allocation12_spill]] }
 0x4ba   : > { %p22_p7 = scmp.ge.s32.totalorder %s25_s18, 4   ;;  %s3258_s17 = sld [smem:[#allocation13_spill]] }
 0x4bb   : > { %s3259_s13 = smov %s2799_s14  ;;  %s3260_s14 = smov %s2803_s15 }
 0x4bc   : > { %s3261_s15 = smov %s2936_s26  ;;  %24 = sbr.rel (!%p22_p7) target bundleno = 8 (0x8), region = 116 }
 0x4c1   :  { %2084 = vsyncpa [#allocation3], 1 }
 0x4c2   :  { %2086 = vsyncpa [#allocation3 + $0x1], 1 }
 0x4c3   :  { %2087 = vsyncpa [#allocation6], 1 }
 0x4c4   :  { %2088 = vsyncpa [#allocation4], 1 }
 0x4c5   :  { %2090 = vsyncpa [#allocation4 + $0x1], 1 }

</bundles_post_ra>
